<compile_context>
chip_gen: v5e
topology: v5e:2x2
jax: 0.10.0
libtpu: 0.0.40
codegen_flags: <defaults>
</compile_context>

<pallas_src>
import functools

import jax
import jax.numpy as jnp
from jax.experimental import pallas as pl
from jax.experimental.pallas import tpu as pltpu

LANE = 128
MXU_TILE = 256          # v6e / v7x MXU pass width
NEG_INF = -1e30


def _round_up(x, m):
    return ((x + m - 1) // m) * m


def _pad2d(a, rows, cols):
    r, c = a.shape
    return jnp.pad(a, ((0, rows - r), (0, cols - c)))


# ---------------------------------------------------------------------------
# Kernels (each grid step handles one tile of TM node rows)
# ---------------------------------------------------------------------------
def gcn_hop1_kernel(adj_ref, x_ref, w1_ref, b1_ref, w2_ref, p2_ref):
    """proj2[rows] = relu(adj[rows,:] @ x @ W1 + b1) @ W2  (fc1 + ReLU + fc2 projection).

    Aggregate-first (adj @ x, then @ W1): in the row-tiled grid this does no redundant
    work across tiles (project-first would recompute x @ W1 once per row tile).
    """
    agg = jnp.dot(adj_ref[...], x_ref[...], preferred_element_type=jnp.float32)
    h1 = jnp.maximum(
        jnp.dot(agg.astype(jnp.bfloat16), w1_ref[...],
                preferred_element_type=jnp.float32) + b1_ref[...], 0.0)
    # dropout == identity (eval mode).  Fold fc2's projection here so only a lane-dense
    # (TM, H2p) bf16 slab (instead of the (TM, H1p) f32 h1) goes back to HBM.
    p2_ref[...] = jnp.dot(h1.astype(jnp.bfloat16), w2_ref[...],
                          preferred_element_type=jnp.float32).astype(jnp.bfloat16)


def gcn_hop2_kernel(adj_ref, p2_ref, b2_ref, w3_ref, b3_ref, logp_ref, t_ref):
    """t[rows] = relu(adj[rows,:] @ proj2 + b2);  logp = log_softmax(t @ W3 + b3).

    No in-kernel class masking: padded class columns of b3 carry -1e30 from prep, so
    they vanish in the max/exp/sum of the log_softmax.
    """
    agg = jnp.dot(adj_ref[...], p2_ref[...], preferred_element_type=jnp.float32)
    t = jnp.maximum(agg + b2_ref[...], 0.0)
    t_ref[...] = t
    z = jnp.dot(t.astype(jnp.bfloat16), w3_ref[...],
                preferred_element_type=jnp.float32) + b3_ref[...]
    m = jnp.max(z, axis=1, keepdims=True)
    e = jnp.exp(z - m)
    s = jnp.sum(e, axis=1, keepdims=True)
    logp_ref[...] = z - m - jnp.log(s)


# ---------------------------------------------------------------------------
# Tiling / compiler-parameter helpers (all static Python ints)
# ---------------------------------------------------------------------------
def _pick_row_tile(n_p):
    # Prefer 256-row tiles (v6e/v7x MXU); 128 is the v5e-native fallback.
    tm = MXU_TILE if (n_p % MXU_TILE == 0) else LANE
    # Shrink if a double-buffered adj row tile alone would blow a conservative budget.
    while tm > LANE and 2 * tm * n_p * 2 > 24 * 1024 * 1024:
        tm //= 2
    return min(tm, n_p)


def _mosaic_params(vmem_need_bytes):
    # Explicit scoped-VMEM limit: >= every chip's default (16/32 MiB), <= ~48 MiB so the
    # same setting is safe on v7x (64 MiB physical).
    limit = int(min(max(2 * vmem_need_bytes, 32 * 1024 * 1024), 48 * 1024 * 1024))
    return pltpu.CompilerParams(dimension_semantics=("parallel",),
                                vmem_limit_bytes=limit)


# ---------------------------------------------------------------------------
# One-time prep (hoisted out of the per-forward hot path)
# ---------------------------------------------------------------------------
def prepare_graph(adj, x_in):
    """Pad + bf16-cast the (static) graph inputs once."""
    n = adj.shape[0]
    n_feat = x_in.shape[1]
    n_p = _round_up(max(n, LANE), LANE)
    f_p = _round_up(n_feat, LANE)
    adj_p = _pad2d(adj, n_p, n_p).astype(jnp.bfloat16)
    x_p = _pad2d(x_in, n_p, f_p).astype(jnp.bfloat16)
    return adj_p, x_p


def prepare_params(params, n_feat):
    """Transpose to (in, out), pad to lane multiples, cast weights to bf16 — once."""
    (w1, b1), (w2, b2), (w3, b3) = params
    n_h1, n_h2, n_class = w1.shape[0], w2.shape[0], w3.shape[0]
    f_p = _round_up(n_feat, LANE)
    h1_p = _round_up(n_h1, LANE)
    h2_p = _round_up(n_h2, LANE)
    c_p = _round_up(n_class, LANE)

    def prep_w(w, in_p, out_p):
        return _pad2d(w.T, in_p, out_p).astype(jnp.bfloat16)

    def prep_b(b, out_p, pad_value=0.0):
        bp = jnp.full((1, out_p), pad_value, jnp.float32)
        return bp.at[0, :b.shape[0]].set(b.astype(jnp.float32))

    w1p, b1p = prep_w(w1, f_p, h1_p), prep_b(b1, h1_p)
    w2p, b2p = prep_w(w2, h1_p, h2_p), prep_b(b2, h2_p)
    w3p = prep_w(w3, h2_p, c_p)
    # Padded class columns get -1e30 in the bias -> no in-kernel masking needed.
    b3p = prep_b(b3, c_p, pad_value=NEG_INF)
    return (w1p, b1p, w2p, b2p, w3p, b3p), (n_h1, n_h2, n_class)


# ---------------------------------------------------------------------------
# Hot-path forward: two row-tiled fused pallas_calls, nothing else.
# ---------------------------------------------------------------------------
@functools.partial(jax.jit, static_argnames=("dims",))
def gcn_forward_padded(adj_p, x_p, w1p, b1p, w2p, b2p, w3p, b3p, *, dims):
    """Mirrors GCN.forward: returns (log_softmax(fc3(t), axis=1), t)."""
    n, n_feat, n_h1, n_h2, n_class = dims
    n_p = adj_p.shape[0]
    f_p, h1_p = w1p.shape
    h2_p = w2p.shape[1]
    c_p = w3p.shape[1]
    tm = _pick_row_tile(n_p)
    grid = (n_p // tm,)

    def row_spec(cols):
        return pl.BlockSpec((tm, cols), lambda i: (i, 0))

    def full_spec(shape):
        return pl.BlockSpec(shape, lambda i: (0, 0))

    # ---- hop 1: proj2 = relu(adj @ x @ W1 + b1) @ W2  (bf16, lane-dense) ------------
    cost1 = pl.CostEstimate(
        flops=2 * n_p * n_p * f_p + 2 * n_p * f_p * h1_p + 2 * n_p * h1_p * h2_p,
        transcendentals=0,
        bytes_accessed=2 * (n_p * n_p + n_p * f_p + f_p * h1_p + h1_p * h2_p
                            + n_p * h2_p) + 4 * h1_p)
    vmem1 = (2 * (tm * n_p * 2 + tm * h2_p * 2)                       # adj tile + out (dbl buf)
             + 2 * (n_p * f_p + f_p * h1_p + h1_p * h2_p) + 4 * h1_p  # resident operands
             + 4 * tm * (n_p // 8 + h1_p + h2_p))                     # f32 temporaries (rough)
    proj2 = pl.pallas_call(
        gcn_hop1_kernel,
        out_shape=jax.ShapeDtypeStruct((n_p, h2_p), jnp.bfloat16),
        grid=grid,
        in_specs=[row_spec(n_p), full_spec(x_p.shape), full_spec(w1p.shape),
                  full_spec(b1p.shape), full_spec(w2p.shape)],
        out_specs=row_spec(h2_p),
        compiler_params=_mosaic_params(vmem1),
        cost_estimate=cost1,
    )(adj_p, x_p, w1p, b1p, w2p)

    # ---- hop 2: t = relu(adj @ proj2 + b2); logp = log_softmax(t @ W3 + b3) ---------
    cost2 = pl.CostEstimate(
        flops=2 * n_p * n_p * h2_p + 2 * n_p * h2_p * c_p,
        transcendentals=n_p * (c_p + 1),
        bytes_accessed=2 * (n_p * n_p + n_p * h2_p + h2_p * c_p)
                       + 4 * (h2_p + c_p + n_p * c_p + n_p * h2_p))
    vmem2 = (2 * (tm * n_p * 2 + tm * c_p * 4 + tm * h2_p * 4)
             + 2 * (n_p * h2_p * 2 + h2_p * c_p * 2) + 4 * (h2_p + c_p)
             + 4 * tm * (h2_p + c_p))
    logp_p, t_p = pl.pallas_call(
        gcn_hop2_kernel,
        out_shape=(jax.ShapeDtypeStruct((n_p, c_p), jnp.float32),
                   jax.ShapeDtypeStruct((n_p, h2_p), jnp.float32)),
        grid=grid,
        in_specs=[row_spec(n_p), full_spec(proj2.shape), full_spec(b2p.shape),
                  full_spec(w3p.shape), full_spec(b3p.shape)],
        out_specs=(row_spec(c_p), row_spec(h2_p)),
        compiler_params=_mosaic_params(vmem2),
        cost_estimate=cost2,
    )(adj_p, proj2, b2p, w3p, b3p)

    return logp_p[:n, :n_class], t_p[:n, :n_h2]


# Pure-JAX reference (f32) for correctness checking.
def gcn_forward_ref(x_in, adj, params):
    (w1, b1), (w2, b2), (w3, b3) = params
    h1 = jax.nn.relu(adj @ x_in @ w1.T + b1)
    t = jax.nn.relu(adj @ h1 @ w2.T + b2)
    z = t @ w3.T + b3
    return jax.nn.log_softmax(z, axis=1), t


# ---------------------------------------------------------------------------
# Deterministic parameter / input construction
# ---------------------------------------------------------------------------
def init_linear(key, in_dim, out_dim):
    """nn.Linear default init: U(-1/sqrt(in), 1/sqrt(in)) for W and b."""
    kw, kb = jax.random.split(key)
    bound = 1.0 / jnp.sqrt(in_dim)
    w = jax.random.uniform(kw, (out_dim, in_dim), jnp.float32, -bound, bound)
    b = jax.random.uniform(kb, (out_dim,), jnp.float32, -bound, bound)
    return w, b


def make_normalized_adj(key, n):
    """Symmetric D^-1/2 (A+I) D^-1/2 normalized adjacency (dense)."""
    a = (jax.random.uniform(key, (n, n)) < 0.2).astype(jnp.float32)
    a = jnp.maximum(a, a.T)
    a = a + jnp.eye(n, dtype=jnp.float32)
    dinv = 1.0 / jnp.sqrt(jnp.sum(a, axis=1))
    return a * dinv[:, None] * dinv[None, :]


if __name__ == "__main__":
    # Small shapes consistent with the module (n_hidden_1=256, n_hidden_2=32).
    N = 64
    n_feat = 96
    n_hidden_1 = 256
    n_hidden_2 = 32
    n_class = 8

    key = jax.random.PRNGKey(0)
    k_adj, k_x, k1, k2, k3 = jax.random.split(key, 5)

    adj = make_normalized_adj(k_adj, N)
    x_in = jax.random.normal(k_x, (N, n_feat), jnp.float32)

    params = (
        init_linear(k1, n_feat, n_hidden_1),
        init_linear(k2, n_hidden_1, n_hidden_2),
        init_linear(k3, n_hidden_2, n_class),
    )

    # One-time prep (hoisted out of the per-forward hot path).
    adj_p, x_p = prepare_graph(adj, x_in)
    (w1p, b1p, w2p, b2p, w3p, b3p), (h1d, h2d, cd) = prepare_params(params, n_feat)
    jax.block_until_ready((adj_p, x_p, w1p, b1p, w2p, b2p, w3p, b3p))
    dims = (N, n_feat, h1d, h2d, cd)

    logp, t = gcn_forward_padded(adj_p, x_p, w1p, b1p, w2p, b2p, w3p, b3p, dims=dims)
    jax.block_until_ready((logp, t))

    # correctness checks
    assert logp.shape == (N, n_class) and t.shape == (N, n_hidden_2)
    assert jnp.allclose(jnp.sum(jnp.exp(logp), axis=1), 1.0, atol=1e-4)
    assert jnp.all(t >= 0.0)
    logp_ref, t_ref = gcn_forward_ref(x_in, adj, params)
    assert jnp.allclose(logp, logp_ref, atol=0.1, rtol=0.1), "logp mismatch vs reference"
    assert jnp.allclose(t, t_ref, atol=0.1, rtol=0.1), "t mismatch vs reference"

    print("KERNEL_OK")
</pallas_src>

<mosaic_0001>
module attributes {stable_mosaic.version = 11 : i64} {
  func.func @gcn_hop2_kernel(%arg0: i32, %arg1: memref<128x128xbf16, #tpu.memory_space<vmem>>, %arg2: memref<128x128xbf16, #tpu.memory_space<vmem>>, %arg3: memref<1x128xf32, #tpu.memory_space<vmem>>, %arg4: memref<128x128xbf16, #tpu.memory_space<vmem>>, %arg5: memref<1x128xf32, #tpu.memory_space<vmem>>, %arg6: memref<128x128xf32, #tpu.memory_space<vmem>>, %arg7: memref<128x128xf32, #tpu.memory_space<vmem>>) attributes {dimension_semantics = [#tpu.dimension_semantics<parallel>], iteration_bounds = array<i64: 1>, scalar_prefetch = 0 : i64, scratch_operands = 0 : i64, tpu.core_type = #tpu.core_type<tc>, window_params = [{transform_indices = @transform_0, window_bounds = array<i64: 128, 128>}, {pipeline_mode = #tpu.pipeline_mode<synchronous>, transform_indices = @transform_1, window_bounds = array<i64: 128, 128>}, {pipeline_mode = #tpu.pipeline_mode<synchronous>, transform_indices = @transform_2, window_bounds = array<i64: 1, 128>}, {pipeline_mode = #tpu.pipeline_mode<synchronous>, transform_indices = @transform_3, window_bounds = array<i64: 128, 128>}, {pipeline_mode = #tpu.pipeline_mode<synchronous>, transform_indices = @transform_4, window_bounds = array<i64: 1, 128>}, {transform_indices = @transform_5, window_bounds = array<i64: 128, 128>}, {transform_indices = @transform_6, window_bounds = array<i64: 128, 128>}]} {
    %c0 = arith.constant 0 : index
    %c0_0 = arith.constant 0 : index
    %0 = vector.load %arg1[%c0, %c0_0] : memref<128x128xbf16, #tpu.memory_space<vmem>>, vector<128x128xbf16>
    %c0_1 = arith.constant 0 : index
    %c0_2 = arith.constant 0 : index
    %1 = vector.load %arg2[%c0_1, %c0_2] : memref<128x128xbf16, #tpu.memory_space<vmem>>, vector<128x128xbf16>
    %cst = arith.constant dense<0.000000e+00> : vector<128x128xf32>
    %2 = tpu.matmul %0, %1, %cst {dimension_numbers = #tpu.dot_dimension_numbers<[1], [0], [0], [1], [0, 0, 1, 1], [], []>} : vector<128x128xbf16>, vector<128x128xbf16>, vector<128x128xf32> -> vector<128x128xf32>
    %c0_3 = arith.constant 0 : index
    %c0_4 = arith.constant 0 : index
    %3 = vector.load %arg3[%c0_3, %c0_4] : memref<1x128xf32, #tpu.memory_space<vmem>>, vector<1x128xf32>
    %4 = vector.broadcast %3 : vector<1x128xf32> to vector<128x128xf32>
    %5 = arith.addf %2, %4 : vector<128x128xf32>
    %cst_5 = arith.constant 0.000000e+00 : f32
    %6 = vector.broadcast %cst_5 : f32 to vector<128x128xf32>
    %7 = arith.maximumf %5, %6 : vector<128x128xf32>
    %c0_6 = arith.constant 0 : index
    %c0_7 = arith.constant 0 : index
    %8 = vector.load %arg7[%c0_6, %c0_7] : memref<128x128xf32, #tpu.memory_space<vmem>>, vector<128x128xf32>
    tpu.vector_store %arg7[%c0_6, %c0_7], %7 {strides = array<i32>} : memref<128x128xf32, #tpu.memory_space<vmem>>, vector<128x128xf32>,
    %9 = arith.truncf %7 : vector<128x128xf32> to vector<128x128xbf16>
    %c0_8 = arith.constant 0 : index
    %c0_9 = arith.constant 0 : index
    %10 = vector.load %arg4[%c0_8, %c0_9] : memref<128x128xbf16, #tpu.memory_space<vmem>>, vector<128x128xbf16>
    %cst_10 = arith.constant dense<0.000000e+00> : vector<128x128xf32>
    %11 = tpu.matmul %9, %10, %cst_10 {dimension_numbers = #tpu.dot_dimension_numbers<[1], [0], [0], [1], [0, 0, 1, 1], [], []>} : vector<128x128xbf16>, vector<128x128xbf16>, vector<128x128xf32> -> vector<128x128xf32>
    %c0_11 = arith.constant 0 : index
    %c0_12 = arith.constant 0 : index
    %12 = vector.load %arg5[%c0_11, %c0_12] : memref<1x128xf32, #tpu.memory_space<vmem>>, vector<1x128xf32>
    %13 = vector.broadcast %12 : vector<1x128xf32> to vector<128x128xf32>
    %14 = arith.addf %11, %13 : vector<128x128xf32>
    %cst_13 = arith.constant dense<0xFF800000> : vector<128xf32>
    %15 = vector.multi_reduction <maximumf>, %14, %cst_13 [1] : vector<128x128xf32> to vector<128xf32>
    %16 = vector.shape_cast %15 : vector<128xf32> to vector<128x1xf32>
    %17 = vector.broadcast %16 : vector<128x1xf32> to vector<128x128xf32>
    %18 = arith.subf %14, %17 : vector<128x128xf32>
    %19 = math.exp %18 : vector<128x128xf32>
    %cst_14 = arith.constant dense<0.000000e+00> : vector<128xf32>
    %20 = vector.multi_reduction <add>, %19, %cst_14 [1] : vector<128x128xf32> to vector<128xf32>
    %21 = vector.shape_cast %20 : vector<128xf32> to vector<128x1xf32>
    %22 = vector.broadcast %16 : vector<128x1xf32> to vector<128x128xf32>
    %23 = arith.subf %14, %22 : vector<128x128xf32>
    %24 = math.log %21 : vector<128x1xf32>
    %25 = vector.broadcast %24 : vector<128x1xf32> to vector<128x128xf32>
    %26 = arith.subf %23, %25 : vector<128x128xf32>
    %c0_15 = arith.constant 0 : index
    %c0_16 = arith.constant 0 : index
    %27 = vector.load %arg6[%c0_15, %c0_16] : memref<128x128xf32, #tpu.memory_space<vmem>>, vector<128x128xf32>
    tpu.vector_store %arg6[%c0_15, %c0_16], %26 {strides = array<i32>} : memref<128x128xf32, #tpu.memory_space<vmem>>, vector<128x128xf32>,
    return
  }
  func.func @transform_0(%arg0: i32) -> (i32, i32) {
    %c0_i32 = arith.constant 0 : i32
    %c0_i32_0 = arith.constant 0 : i32
    return %arg0, %c0_i32 : i32, i32
  }
  func.func @transform_1(%arg0: i32) -> (i32, i32) {
    %c0_i32 = arith.constant 0 : i32
    %c0_i32_0 = arith.constant 0 : i32
    %c0_i32_1 = arith.constant 0 : i32
    return %c0_i32, %c0_i32_0 : i32, i32
  }
  func.func @transform_2(%arg0: i32) -> (i32, i32) {
    %c0_i32 = arith.constant 0 : i32
    %c0_i32_0 = arith.constant 0 : i32
    %c0_i32_1 = arith.constant 0 : i32
    return %c0_i32, %c0_i32_0 : i32, i32
  }
  func.func @transform_3(%arg0: i32) -> (i32, i32) {
    %c0_i32 = arith.constant 0 : i32
    %c0_i32_0 = arith.constant 0 : i32
    %c0_i32_1 = arith.constant 0 : i32
    return %c0_i32, %c0_i32_0 : i32, i32
  }
  func.func @transform_4(%arg0: i32) -> (i32, i32) {
    %c0_i32 = arith.constant 0 : i32
    %c0_i32_0 = arith.constant 0 : i32
    %c0_i32_1 = arith.constant 0 : i32
    return %c0_i32, %c0_i32_0 : i32, i32
  }
  func.func @transform_5(%arg0: i32) -> (i32, i32) {
    %c0_i32 = arith.constant 0 : i32
    %c0_i32_0 = arith.constant 0 : i32
    return %arg0, %c0_i32 : i32, i32
  }
  func.func @transform_6(%arg0: i32) -> (i32, i32) {
    %c0_i32 = arith.constant 0 : i32
    %c0_i32_0 = arith.constant 0 : i32
    return %arg0, %c0_i32 : i32, i32
  }
}

module attributes {stable_mosaic.version = 11 : i64} {
  func.func @gcn_hop1_kernel(%arg0: i32, %arg1: memref<128x128xbf16, #tpu.memory_space<vmem>>, %arg2: memref<128x128xbf16, #tpu.memory_space<vmem>>, %arg3: memref<128x256xbf16, #tpu.memory_space<vmem>>, %arg4: memref<1x256xf32, #tpu.memory_space<vmem>>, %arg5: memref<256x128xbf16, #tpu.memory_space<vmem>>, %arg6: memref<128x128xbf16, #tpu.memory_space<vmem>>) attributes {dimension_semantics = [#tpu.dimension_semantics<parallel>], iteration_bounds = array<i64: 1>, scalar_prefetch = 0 : i64, scratch_operands = 0 : i64, tpu.core_type = #tpu.core_type<tc>, window_params = [{transform_indices = @transform_0, window_bounds = array<i64: 128, 128>}, {pipeline_mode = #tpu.pipeline_mode<synchronous>, transform_indices = @transform_1, window_bounds = array<i64: 128, 128>}, {pipeline_mode = #tpu.pipeline_mode<synchronous>, transform_indices = @transform_2, window_bounds = array<i64: 128, 256>}, {pipeline_mode = #tpu.pipeline_mode<synchronous>, transform_indices = @transform_3, window_bounds = array<i64: 1, 256>}, {pipeline_mode = #tpu.pipeline_mode<synchronous>, transform_indices = @transform_4, window_bounds = array<i64: 256, 128>}, {transform_indices = @transform_5, window_bounds = array<i64: 128, 128>}]} {
    %c0 = arith.constant 0 : index
    %c0_0 = arith.constant 0 : index
    %0 = vector.load %arg1[%c0, %c0_0] : memref<128x128xbf16, #tpu.memory_space<vmem>>, vector<128x128xbf16>
    %c0_1 = arith.constant 0 : index
    %c0_2 = arith.constant 0 : index
    %1 = vector.load %arg2[%c0_1, %c0_2] : memref<128x128xbf16, #tpu.memory_space<vmem>>, vector<128x128xbf16>
    %cst = arith.constant dense<0.000000e+00> : vector<128x128xf32>
    %2 = tpu.matmul %0, %1, %cst {dimension_numbers = #tpu.dot_dimension_numbers<[1], [0], [0], [1], [0, 0, 1, 1], [], []>} : vector<128x128xbf16>, vector<128x128xbf16>, vector<128x128xf32> -> vector<128x128xf32>
    %3 = arith.truncf %2 : vector<128x128xf32> to vector<128x128xbf16>
    %c0_3 = arith.constant 0 : index
    %c0_4 = arith.constant 0 : index
    %4 = vector.load %arg3[%c0_3, %c0_4] : memref<128x256xbf16, #tpu.memory_space<vmem>>, vector<128x256xbf16>
    %cst_5 = arith.constant dense<0.000000e+00> : vector<128x256xf32>
    %5 = tpu.matmul %3, %4, %cst_5 {dimension_numbers = #tpu.dot_dimension_numbers<[1], [0], [0], [1], [0, 0, 1, 1], [], []>} : vector<128x128xbf16>, vector<128x256xbf16>, vector<128x256xf32> -> vector<128x256xf32>
    %c0_6 = arith.constant 0 : index
    %c0_7 = arith.constant 0 : index
    %6 = vector.load %arg4[%c0_6, %c0_7] : memref<1x256xf32, #tpu.memory_space<vmem>>, vector<1x256xf32>
    %7 = vector.broadcast %6 : vector<1x256xf32> to vector<128x256xf32>
    %8 = arith.addf %5, %7 : vector<128x256xf32>
    %cst_8 = arith.constant 0.000000e+00 : f32
    %9 = vector.broadcast %cst_8 : f32 to vector<128x256xf32>
    %10 = arith.maximumf %8, %9 : vector<128x256xf32>
    %11 = arith.truncf %10 : vector<128x256xf32> to vector<128x256xbf16>
    %c0_9 = arith.constant 0 : index
    %c0_10 = arith.constant 0 : index
    %12 = vector.load %arg5[%c0_9, %c0_10] : memref<256x128xbf16, #tpu.memory_space<vmem>>, vector<256x128xbf16>
    %cst_11 = arith.constant dense<0.000000e+00> : vector<128x128xf32>
    %13 = tpu.matmul %11, %12, %cst_11 {dimension_numbers = #tpu.dot_dimension_numbers<[1], [0], [0], [1], [0, 0, 1, 1], [], []>} : vector<128x256xbf16>, vector<256x128xbf16>, vector<128x128xf32> -> vector<128x128xf32>
    %14 = arith.truncf %13 : vector<128x128xf32> to vector<128x128xbf16>
    %c0_12 = arith.constant 0 : index
    %c0_13 = arith.constant 0 : index
    %15 = vector.load %arg6[%c0_12, %c0_13] : memref<128x128xbf16, #tpu.memory_space<vmem>>, vector<128x128xbf16>
    tpu.vector_store %arg6[%c0_12, %c0_13], %14 {strides = array<i32>} : memref<128x128xbf16, #tpu.memory_space<vmem>>, vector<128x128xbf16>,
    return
  }
  func.func @transform_0(%arg0: i32) -> (i32, i32) {
    %c0_i32 = arith.constant 0 : i32
    %c0_i32_0 = arith.constant 0 : i32
    return %arg0, %c0_i32 : i32, i32
  }
  func.func @transform_1(%arg0: i32) -> (i32, i32) {
    %c0_i32 = arith.constant 0 : i32
    %c0_i32_0 = arith.constant 0 : i32
    %c0_i32_1 = arith.constant 0 : i32
    return %c0_i32, %c0_i32_0 : i32, i32
  }
  func.func @transform_2(%arg0: i32) -> (i32, i32) {
    %c0_i32 = arith.constant 0 : i32
    %c0_i32_0 = arith.constant 0 : i32
    %c0_i32_1 = arith.constant 0 : i32
    return %c0_i32, %c0_i32_0 : i32, i32
  }
  func.func @transform_3(%arg0: i32) -> (i32, i32) {
    %c0_i32 = arith.constant 0 : i32
    %c0_i32_0 = arith.constant 0 : i32
    %c0_i32_1 = arith.constant 0 : i32
    return %c0_i32, %c0_i32_0 : i32, i32
  }
  func.func @transform_4(%arg0: i32) -> (i32, i32) {
    %c0_i32 = arith.constant 0 : i32
    %c0_i32_0 = arith.constant 0 : i32
    %c0_i32_1 = arith.constant 0 : i32
    return %c0_i32, %c0_i32_0 : i32, i32
  }
  func.func @transform_5(%arg0: i32) -> (i32, i32) {
    %c0_i32 = arith.constant 0 : i32
    %c0_i32_0 = arith.constant 0 : i32
    return %arg0, %c0_i32 : i32, i32
  }
}

</mosaic_0001>

<bundles_post_ra>
// kernel: gcn_forward_padded.3
= control target key start
LH: loop header
LB: loop body
LE: loop exit
PB: predicated region body
PF: predicated region fallthrough
CT: control target
= control target key end

     0   :  { %s1077_s1 = inlined_call_operand.vmem [shape: bf16[128,128], index: 1, kind: input, shape index: {}]   ;;  %s1078_s2 = inlined_call_operand.vmem [shape: f32[1,128], index: 2, kind: input, shape index: {}]   ;;  %s1079_s0 = inlined_call_operand.vmem [shape: bf16[128,128], index: 0, kind: input, shape index: {}]   ;;  %s1080_s3 = inlined_call_operand.vmem [shape: bf16[128,128], index: 3, kind: input, shape index: {}]   ;;  %s1081_s4 = inlined_call_operand.vmem [shape: f32[1,128], index: 4, kind: input, shape index: {}]   ;;  %s1082_s6 = inlined_call_operand.vmem [shape: f32[128,128], index: 6, kind: output, shape index: {1}]   ;;  %s1083_s5 = inlined_call_operand.vmem [shape: f32[128,128], index: 5, kind: output, shape index: {0}]  }
   0x1   :  { %v655_v0 = vld [vmem:[%s1077_s1 + $0x38] sm:$0xff]  ;;  %v654_v1 = vld [vmem:[%s1077_s1 + $0x30] sm:$0xff]  ;;  %v653_v2 = vld [vmem:[%s1077_s1 + $0x28] sm:$0xff] }
   0x2   :  { %154 = vmatpush.bf16.msra.mxu0 %v655_v0  ;;  %664 = vmatpush.bf16.msra.mxu2 %v655_v0  ;;  %v652_v3 = vld [vmem:[%s1077_s1 + $0x20] sm:$0xff]  ;;  %v651_v4 = vld [vmem:[%s1077_s1 + $0x18] sm:$0xff]  ;;  %v650_v5 = vld [vmem:[%s1077_s1 + $0x10] sm:$0xff] }
   0x3   :  { %v649_v6 = vld [vmem:[%s1077_s1 + $0x8] sm:$0xff]  ;;  %v648_v7 = vld [vmem:[%s1077_s1] sm:$0xff]  ;;  %v663_v12 = vld [vmem:[%s1080_s3 + $0x38] sm:$0xff] }
   0x4   :  { %v640_v8 = vld [vmem:[%s1079_s0] sm:$0xff]  ;;  %v641_v10 = vld [vmem:[%s1079_s0 + $0x8] sm:$0xff]  ;;  %311 = vmatpush.bf16.msra.mxu1 %v663_v12  ;;  %v662_v13 = vld [vmem:[%s1080_s3 + $0x30] sm:$0xff]  ;;  %672 = vmatpush.bf16.msra.mxu3 %v663_v12 }
   0x5   :  { %v644_v9 = vld [vmem:[%s1079_s0 + $0x20] sm:$0xff]  ;;  %v645_v11 = vld [vmem:[%s1079_s0 + $0x28] sm:$0xff]  ;;  %v642_v16 = vld [vmem:[%s1079_s0 + $0x10] sm:$0xff] }
   0x6   :  { %155 = vmatpush.bf16.msra.mxu0 %v654_v1  ;;  %665 = vmatpush.bf16.msra.mxu2 %v654_v1  ;;  %v661_v14 = vld [vmem:[%s1080_s3 + $0x28] sm:$0xff]  ;;  %v660_v15 = vld [vmem:[%s1080_s3 + $0x20] sm:$0xff]  ;;  %v646_v17 = vld [vmem:[%s1079_s0 + $0x30] sm:$0xff] }
   0x7   :  { %v643_v18 = vld [vmem:[%s1079_s0 + $0x18] sm:$0xff]  ;;  %v658_v21 = vld [vmem:[%s1080_s3 + $0x10] sm:$0xff]  ;;  %v657_v22 = vld [vmem:[%s1080_s3 + $0x8] sm:$0xff] }
   0x8   :  { %312 = vmatpush.bf16.msra.mxu1 %v662_v13  ;;  %673 = vmatpush.bf16.msra.mxu3 %v662_v13  ;;  %v647_v19 = vld [vmem:[%s1079_s0 + $0x38] sm:$0xff]  ;;  %v656_v23 = vld [vmem:[%s1080_s3] sm:$0xff] }
   0x9   :  { %v659_v20 = vld [vmem:[%s1080_s3 + $0x18] sm:$0xff]  ;;  %v856_v24 = vld [vmem:[%s1078_s2] ss:$0 sm:$0xff] }
   0xa   :  { %156 = vmatpush.bf16.msra.mxu0 %v653_v2  ;;  %666 = vmatpush.bf16.msra.mxu2 %v653_v2 }
   0xc   :  { %313 = vmatpush.bf16.msra.mxu1 %v661_v14  ;;  %674 = vmatpush.bf16.msra.mxu3 %v661_v14 }
   0xe   :  { %157 = vmatpush.bf16.msra.mxu0 %v652_v3  ;;  %667 = vmatpush.bf16.msra.mxu2 %v652_v3 }
  0x10   :  { %314 = vmatpush.bf16.msra.mxu1 %v660_v15  ;;  %675 = vmatpush.bf16.msra.mxu3 %v660_v15 }
  0x12   :  { %158 = vmatpush.bf16.msra.mxu0 %v651_v4  ;;  %668 = vmatpush.bf16.msra.mxu2 %v651_v4 }
  0x14   :  { %315 = vmatpush.bf16.msra.mxu1 %v659_v20  ;;  %676 = vmatpush.bf16.msra.mxu3 %v659_v20 }
  0x16   :  { %159 = vmatpush.bf16.msra.mxu0 %v650_v5  ;;  %669 = vmatpush.bf16.msra.mxu2 %v650_v5 }
  0x18   :  { %316 = vmatpush.bf16.msra.mxu1 %v658_v21  ;;  %677 = vmatpush.bf16.msra.mxu3 %v658_v21 }
  0x1a   :  { %160 = vmatpush.bf16.msra.mxu0 %v649_v6  ;;  %670 = vmatpush.bf16.msra.mxu2 %v649_v6 }
  0x1c   :  { %317 = vmatpush.bf16.msra.mxu1 %v657_v22  ;;  %678 = vmatpush.bf16.msra.mxu3 %v657_v22 }
  0x1e   :  { %161 = vmatpush.bf16.msra.mxu0 %v648_v7  ;;  %671 = vmatpush.bf16.msra.mxu2 %v648_v7 }
  0x20   :  { %318 = vmatpush.bf16.msra.mxu1 %v656_v23  ;;  %679 = vmatpush.bf16.msra.mxu3 %v656_v23 }
  0x21   :  { %162 = vmatmul.bf16.vlgmr.msra.gmra.mxu0 %v640_v8  ;;  %182 = vmatmul.bf16.vlgmr.msra.gmra.mxu2 %v644_v9 }
  0x31   :  { %167 = vmatmul.bf16.gmra.mxu0 %v641_v10  ;;  %187 = vmatmul.bf16.gmra.mxu2 %v645_v11 }
  0x41   :  { %172 = vmatmul.bf16.gmra.mxu0 %v642_v16  ;;  %192 = vmatmul.bf16.gmra.mxu2 %v646_v17  ;;  %v681_v17 = vld [vmem:[%s1081_s4] ss:$0 sm:$0xff] }
  0x51   :  { %177 = vmatmul.bf16.gmra.mxu0 %v643_v18  ;;  %197 = vmatmul.bf16.gmra.mxu2 %v647_v19 }
  0x9e   :  { %v163_v25 = vpop.f32.mrf.mxu0 }
  0x9f   :  { %v164_v26 = vadd.f32 %v856_v24, %v163_v25 }
  0xa1   :  { %v203_v27 = vmax.f32 %v164_v26, 0.0 }
  0xa3   :  { %219 = vst [vmem:[%s1082_s6] sm:$0xff] %v203_v27 }
  0xa4   :  { %v183_v28 = vpop.f32.mrf.mxu2 }
  0xa5   :  { %v184_v29 = vadd.f32 %v856_v24, %v183_v28 }
  0xa6   :  { %v165_v30 = vpop.f32.mrf.mxu0 }
  0xa7   :  { %v211_v31 = vmax.f32 %v184_v29, 0.0  ;;  %v166_v32 = vadd.f32 %v856_v24, %v165_v30 }
  0xa9   :  { %227 = vst [vmem:[%s1082_s6 + $0x40] sm:$0xff] %v211_v31  ;;  %v204_v33 = vmax.f32 %v166_v32, 0.0 }
  0xab   :  { %220 = vst [vmem:[%s1082_s6 + $0x8] sm:$0xff] %v204_v33  ;;  %v235_v34 = vpack.c.bf16 %v204_v33, %v203_v27 }
  0xac   :  { %v185_v35 = vpop.f32.mrf.mxu2 }
  0xad   :  { %v186_v36 = vadd.f32 %v856_v24, %v185_v35  ;;  %319 = vmatmul.bf16.vlgmr.msra.gmra.mxu1 %v235_v34 }
  0xae   :  { %v168_v37 = vpop.f32.mrf.mxu0 }
  0xaf   :  { %v212_v38 = vmax.f32 %v186_v36, 0.0  ;;  %v169_v39 = vadd.f32 %v856_v24, %v168_v37 }
  0xb1   :  { %228 = vst [vmem:[%s1082_s6 + $0x48] sm:$0xff] %v212_v38  ;;  %v205_v40 = vmax.f32 %v169_v39, 0.0  ;;  %v239_v41 = vpack.c.bf16 %v212_v38, %v211_v31 }
  0xb3   :  { %221 = vst [vmem:[%s1082_s6 + $0x10] sm:$0xff] %v205_v40  ;;  %339 = vmatmul.bf16.vlgmr.msra.gmra.mxu3 %v239_v41 }
  0xb4   :  { %v188_v42 = vpop.f32.mrf.mxu2 }
  0xb5   :  { %v189_v43 = vadd.f32 %v856_v24, %v188_v42 }
  0xb6   :  { %v170_v44 = vpop.f32.mrf.mxu0 }
  0xb7   :  { %v213_v45 = vmax.f32 %v189_v43, 0.0  ;;  %v171_v46 = vadd.f32 %v856_v24, %v170_v44 }
  0xb9   :  { %229 = vst [vmem:[%s1082_s6 + $0x50] sm:$0xff] %v213_v45  ;;  %v206_v47 = vmax.f32 %v171_v46, 0.0 }
  0xbb   :  { %222 = vst [vmem:[%s1082_s6 + $0x18] sm:$0xff] %v206_v47  ;;  %v236_v48 = vpack.c.bf16 %v206_v47, %v205_v40 }
  0xbc   :  { %v190_v49 = vpop.f32.mrf.mxu2 }
  0xbd   :  { %v191_v50 = vadd.f32 %v856_v24, %v190_v49  ;;  %324 = vmatmul.bf16.gmra.mxu1 %v236_v48 }
  0xbe   :  { %v173_v51 = vpop.f32.mrf.mxu0 }
  0xbf   :  { %v214_v52 = vmax.f32 %v191_v50, 0.0  ;;  %v174_v53 = vadd.f32 %v856_v24, %v173_v51 }
  0xc1   :  { %230 = vst [vmem:[%s1082_s6 + $0x58] sm:$0xff] %v214_v52  ;;  %v207_v54 = vmax.f32 %v174_v53, 0.0  ;;  %v240_v55 = vpack.c.bf16 %v214_v52, %v213_v45 }
  0xc3   :  { %223 = vst [vmem:[%s1082_s6 + $0x20] sm:$0xff] %v207_v54  ;;  %344 = vmatmul.bf16.gmra.mxu3 %v240_v55 }
  0xc4   :  { %v193_v56 = vpop.f32.mrf.mxu2 }
  0xc5   :  { %v194_v57 = vadd.f32 %v856_v24, %v193_v56 }
  0xc6   :  { %v175_v58 = vpop.f32.mrf.mxu0 }
  0xc7   :  { %v215_v59 = vmax.f32 %v194_v57, 0.0  ;;  %v176_v60 = vadd.f32 %v856_v24, %v175_v58 }
  0xc9   :  { %231 = vst [vmem:[%s1082_s6 + $0x60] sm:$0xff] %v215_v59  ;;  %v208_v61 = vmax.f32 %v176_v60, 0.0 }
  0xcb   :  { %224 = vst [vmem:[%s1082_s6 + $0x28] sm:$0xff] %v208_v61  ;;  %v237_v62 = vpack.c.bf16 %v208_v61, %v207_v54 }
  0xcc   :  { %v195_v63 = vpop.f32.mrf.mxu2 }
  0xcd   :  { %v196_v0 = vadd.f32 %v856_v24, %v195_v63  ;;  %329 = vmatmul.bf16.gmra.mxu1 %v237_v62 }
  0xce   :  { %v178_v1 = vpop.f32.mrf.mxu0 }
  0xcf   :  { %v216_v2 = vmax.f32 %v196_v0, 0.0  ;;  %v179_v3 = vadd.f32 %v856_v24, %v178_v1 }
  0xd1   :  { %232 = vst [vmem:[%s1082_s6 + $0x68] sm:$0xff] %v216_v2  ;;  %v209_v4 = vmax.f32 %v179_v3, 0.0  ;;  %v241_v5 = vpack.c.bf16 %v216_v2, %v215_v59 }
  0xd3   :  { %225 = vst [vmem:[%s1082_s6 + $0x30] sm:$0xff] %v209_v4  ;;  %349 = vmatmul.bf16.gmra.mxu3 %v241_v5 }
  0xd4   :  { %v198_v6 = vpop.f32.mrf.mxu2 }
  0xd5   :  { %v199_v7 = vadd.f32 %v856_v24, %v198_v6 }
  0xd6   :  { %v180_v8 = vpop.f32.mrf.mxu0 }
  0xd7   :  { %v217_v9 = vmax.f32 %v199_v7, 0.0  ;;  %v181_v10 = vadd.f32 %v856_v24, %v180_v8 }
  0xd9   :  { %233 = vst [vmem:[%s1082_s6 + $0x70] sm:$0xff] %v217_v9  ;;  %v210_v11 = vmax.f32 %v181_v10, 0.0 }
  0xdb   :  { %226 = vst [vmem:[%s1082_s6 + $0x38] sm:$0xff] %v210_v11  ;;  %v238_v12 = vpack.c.bf16 %v210_v11, %v209_v4 }
  0xdc   :  { %v200_v13 = vpop.f32.mrf.mxu2 }
  0xdd   :  { %v201_v14 = vadd.f32 %v856_v24, %v200_v13  ;;  %334 = vmatmul.bf16.gmra.mxu1 %v238_v12 }
  0xdf   :  { %v218_v15 = vmax.f32 %v201_v14, 0.0 }
  0xe1   :  { %234 = vst [vmem:[%s1082_s6 + $0x78] sm:$0xff] %v218_v15  ;;  %v242_v16 = vpack.c.bf16 %v218_v15, %v217_v9 }
  0xe3   :  { %354 = vmatmul.bf16.gmra.mxu3 %v242_v16 }
 0x12a   :  { %v320_v18 = vpop.f32.mrf.mxu1 }
 0x12b   :  { %v321_v19 = vadd.f32 %v681_v17, %v320_v18 }
 0x12d   :  { %360 = vmax.xlane.f32.xlu0 %v321_v19 }
 0x132   :  { %v322_v20 = vpop.f32.mrf.mxu1 }
 0x133   :  { %v323_v21 = vadd.f32 %v681_v17, %v322_v20 }
 0x135   :  { %362 = vmax.xlane.f32.xlu0 %v323_v21 }
 0x136   :  { %v340_v22 = vpop.f32.mrf.mxu3 }
 0x137   :  { %v341_v23 = vadd.f32 %v681_v17, %v340_v22 }
 0x139   :  { %376 = vmax.xlane.f32.xlu2 %v341_v23 }
 0x13a   :  { %v325_v24 = vpop.f32.mrf.mxu1 }
 0x13b   :  { %v326_v25 = vadd.f32 %v681_v17, %v325_v24 }
 0x13d   :  { %364 = vmax.xlane.f32.xlu1 %v326_v25 }
 0x13e   :  { %v342_v26 = vpop.f32.mrf.mxu3 }
 0x13f   :  { %v343_v27 = vadd.f32 %v681_v17, %v342_v26 }
 0x141   :  { %378 = vmax.xlane.f32.xlu0 %v343_v27 }
 0x142   :  { %v327_v28 = vpop.f32.mrf.mxu1 }
 0x143   :  { %v328_v29 = vadd.f32 %v681_v17, %v327_v28 }
 0x145   :  { %366 = vmax.xlane.f32.xlu1 %v328_v29 }
 0x146   :  { %v345_v30 = vpop.f32.mrf.mxu3 }
 0x147   :  { %v925_v32 = vadd.f32 %v681_v17, %v345_v30 }
 0x14a   :  { %v330_v31 = vpop.f32.mrf.mxu1 }
 0x14b   :  { %v927_v33 = vadd.f32 %v681_v17, %v330_v31 }
 0x14d   :  { %368 = vmax.xlane.f32.xlu2 %v927_v33  ;;  %380 = vmax.xlane.f32.xlu1 %v925_v32 }
 0x14e   :  { %v347_v34 = vpop.f32.mrf.mxu3 }
 0x14f   :  { %v931_v36 = vadd.f32 %v681_v17, %v347_v34 }
 0x152   :  { %v332_v35 = vpop.f32.mrf.mxu1 }
 0x153   :  { %v937_v40 = vadd.f32 %v681_v17, %v332_v35 }
 0x155   :  { %382 = vmax.xlane.f32.xlu2 %v931_v36 }
 0x156   :  { %v350_v37 = vpop.f32.mrf.mxu3 }
 0x157   :  { %v934_v38 = vadd.f32 %v681_v17, %v350_v37 }
 0x159   :  { %384 = vmax.xlane.f32.xlu0 %v934_v38 }
 0x15a   :  { %v335_v39 = vpop.f32.mrf.mxu1 }
 0x15b   :  { %v940_v42 = vadd.f32 %v681_v17, %v335_v39 }
 0x15d   :  { %370 = vmax.xlane.f32.xlu2 %v937_v40 }
 0x15e   :  { %v352_v41 = vpop.f32.mrf.mxu3 }
 0x15f   :  { %v949_v47 = vadd.f32 %v681_v17, %v352_v41 }
 0x161   :  { %372 = vmax.xlane.f32.xlu0 %v940_v42 }
 0x162   :  { %v337_v43 = vpop.f32.mrf.mxu1 }
 0x163   :  { %v943_v44 = vadd.f32 %v681_v17, %v337_v43 }
 0x165   :  { %374 = vmax.xlane.f32.xlu1 %v943_v44 }
 0x166   :  { %v355_v45 = vpop.f32.mrf.mxu3 }
 0x167   :  { %v946_v46 = vadd.f32 %v681_v17, %v355_v45 }
 0x169   :  { %388 = vmax.xlane.f32.xlu2 %v946_v46 }
 0x16d   :  { %386 = vmax.xlane.f32.xlu1 %v949_v47 }
 0x16e   :  { %v357_v48 = vpop.f32.mrf.mxu3 }
 0x16f   :  { %v952_v49 = vadd.f32 %v681_v17, %v357_v48 }
 0x171   :  { %390 = vmax.xlane.f32.xlu0 %v952_v49 }
 0x1a0   :  { %v361_v50 = vpop.xlane.xlu0 %360 }
 0x1a1   :  { %v955_v51 = vsub.f32 %v321_v19, %v361_v50 }
 0x1a3   :  { %v408_v52 = vmul.f32 1.442695, %v955_v51 }
 0x1a5   :  { %682 = vpow2.f32 %v408_v52 }
 0x1a8   :  { %v363_v53 = vpop.xlane.xlu0 %362 }
 0x1a9   :  { %v958_v54 = vsub.f32 %v323_v21, %v363_v53 }
 0x1ab   :  { %v683_v55 = vpop.eup %682  ;;  %v410_v56 = vmul.f32 1.442695, %v958_v54 }
 0x1ac   :  { %v377_v57 = vpop.xlane.xlu2 %376  ;;  %440 = vadd.xlane.f32.xlu1 %v683_v55 }
 0x1ad   :  { %684 = vpow2.f32 %v410_v56  ;;  %v961_v58 = vsub.f32 %v341_v23, %v377_v57 }
 0x1af   :  { %v424_v59 = vmul.f32 1.442695, %v961_v58 }
 0x1b0   :  { %v365_v60 = vpop.xlane.xlu1 %364 }
 0x1b1   :  { %686 = vpow2.f32 %v424_v59  ;;  %v964_v61 = vsub.f32 %v326_v25, %v365_v60 }
 0x1b3   :  { %v685_v62 = vpop.eup %684  ;;  %v412_v63 = vmul.f32 1.442695, %v964_v61 }
 0x1b4   :  { %442 = vadd.xlane.f32.xlu2 %v685_v62  ;;  %v379_v0 = vpop.xlane.xlu0 %378 }
 0x1b5   :  { %v967_v1 = vsub.f32 %v343_v27, %v379_v0  ;;  %688 = vpow2.f32 %v412_v63 }
 0x1b7   :  { %v687_v2 = vpop.eup %686  ;;  %v426_v3 = vmul.f32 1.442695, %v967_v1 }
 0x1b8   :  { %v367_v4 = vpop.xlane.xlu1 %366  ;;  %456 = vadd.xlane.f32.xlu0 %v687_v2 }
 0x1b9   :  { %690 = vpow2.f32 %v426_v3  ;;  %v970_v5 = vsub.f32 %v328_v29, %v367_v4 }
 0x1bb   :  { %v414_v6 = vmul.f32 1.442695, %v970_v5  ;;  %v689_v7 = vpop.eup %688 }
 0x1bd   :  { %692 = vpow2.f32 %v414_v6 }
 0x1bf   :  { %v691_v8 = vpop.eup %690 }
 0x1c0   :  { %v369_v9 = vpop.xlane.xlu2 %368  ;;  %v381_v10 = vpop.xlane.xlu1 %380  ;;  %444 = vadd.xlane.f32.xlu0 %v689_v7  ;;  %458 = vadd.xlane.f32.xlu1 %v691_v8 }
 0x1c1   :  { %v974_v11 = vsub.f32 %v925_v32, %v381_v10  ;;  %v978_v13 = vsub.f32 %v927_v33, %v369_v9 }
 0x1c3   :  { %v428_v12 = vmul.f32 1.442695, %v974_v11  ;;  %v693_v14 = vpop.eup %692  ;;  %v416_v17 = vmul.f32 1.442695, %v978_v13 }
 0x1c5   :  { %694 = vpow2.f32 %v428_v12 }
 0x1c8   :  { %v383_v15 = vpop.xlane.xlu2 %382  ;;  %446 = vadd.xlane.f32.xlu1 %v693_v14 }
 0x1c9   :  { %v981_v16 = vsub.f32 %v931_v36, %v383_v15 }
 0x1cb   :  { %v430_v18 = vmul.f32 1.442695, %v981_v16  ;;  %v695_v19 = vpop.eup %694 }
 0x1cc   :  { %v385_v20 = vpop.xlane.xlu0 %384  ;;  %460 = vadd.xlane.f32.xlu2 %v695_v19 }
 0x1cd   :  { %696 = vpow2.f32 %v430_v18  ;;  %v986_v21 = vsub.f32 %v934_v38, %v385_v20 }
 0x1ce   :  { %698 = vpow2.f32 %v416_v17 }
 0x1cf   :  { %v432_v22 = vmul.f32 1.442695, %v986_v21 }
 0x1d0   :  { %v371_v23 = vpop.xlane.xlu2 %370 }
 0x1d1   :  { %700 = vpow2.f32 %v432_v22  ;;  %v990_v24 = vsub.f32 %v937_v40, %v371_v23 }
 0x1d3   :  { %v697_v25 = vpop.eup %696  ;;  %v418_v26 = vmul.f32 1.442695, %v990_v24 }
 0x1d4   :  { %v699_v27 = vpop.eup %698  ;;  %462 = vadd.xlane.f32.xlu0 %v697_v25  ;;  %v373_v28 = vpop.xlane.xlu0 %372 }
 0x1d5   :  { %702 = vpow2.f32 %v418_v26  ;;  %448 = vadd.xlane.f32.xlu2 %v699_v27  ;;  %v994_v29 = vsub.f32 %v940_v42, %v373_v28 }
 0x1d7   :  { %v701_v30 = vpop.eup %700  ;;  %v420_v31 = vmul.f32 1.442695, %v994_v29 }
 0x1d8   :  { %v375_v32 = vpop.xlane.xlu1 %374  ;;  %464 = vadd.xlane.f32.xlu1 %v701_v30 }
 0x1d9   :  { %704 = vpow2.f32 %v420_v31  ;;  %v998_v33 = vsub.f32 %v943_v44, %v375_v32 }
 0x1db   :  { %v703_v34 = vpop.eup %702  ;;  %v422_v35 = vmul.f32 1.442695, %v998_v33 }
 0x1dc   :  { %v389_v36 = vpop.xlane.xlu2 %388  ;;  %450 = vadd.xlane.f32.xlu0 %v703_v34 }
 0x1dd   :  { %706 = vpow2.f32 %v422_v35  ;;  %v1002_v37 = vsub.f32 %v946_v46, %v389_v36 }
 0x1df   :  { %v705_v38 = vpop.eup %704  ;;  %v436_v39 = vmul.f32 1.442695, %v1002_v37 }
 0x1e0   :  { %v387_v40 = vpop.xlane.xlu1 %386  ;;  %452 = vadd.xlane.f32.xlu1 %v705_v38 }
 0x1e1   :  { %708 = vpow2.f32 %v436_v39  ;;  %v1006_v41 = vsub.f32 %v949_v47, %v387_v40 }
 0x1e3   :  { %v707_v42 = vpop.eup %706  ;;  %v434_v43 = vmul.f32 1.442695, %v1006_v41 }
 0x1e4   :  { %454 = vadd.xlane.f32.xlu2 %v707_v42  ;;  %v391_v44 = vpop.xlane.xlu0 %390 }
 0x1e5   :  { %710 = vpow2.f32 %v434_v43  ;;  %v1010_v45 = vsub.f32 %v952_v49, %v391_v44 }
 0x1e7   :  { %v709_v46 = vpop.eup %708  ;;  %v438_v48 = vmul.f32 1.442695, %v1010_v45 }
 0x1e8   :  { %468 = vadd.xlane.f32.xlu0 %v709_v46 }
 0x1e9   :  { %712 = vpow2.f32 %v438_v48 }
 0x1eb   :  { %v711_v50 = vpop.eup %710 }
 0x1ec   :  { %466 = vadd.xlane.f32.xlu2 %v711_v50 }
 0x1ef   :  { %v713_v52 = vpop.eup %712 }
 0x1f0   :  { %470 = vadd.xlane.f32.xlu1 %v713_v52 }
 0x21f   :  { %v441_v47 = vpop.xlane.xlu1 %440 }
 0x220   :  { %714 = vlog2.f32 %v441_v47 }
 0x226   :  { %v715_v53 = vpop.eup %714 }
 0x227   :  { %v473_v55 = vmul.f32 0.6931472, %v715_v53  ;;  %v443_v56 = vpop.xlane.xlu2 %442 }
 0x228   :  { %716 = vlog2.f32 %v443_v56 }
 0x229   :  { %v504_v57 = vsub.f32 %v955_v51, %v473_v55 }
 0x22b   :  { %520 = vst [vmem:[%s1083_s5] sm:$0xff] %v504_v57  ;;  %v457_v49 = vpop.xlane.xlu0 %456 }
 0x22c   :  { %718 = vlog2.f32 %v457_v49 }
 0x22e   :  { %v717_v59 = vpop.eup %716 }
 0x22f   :  { %v475_v60 = vmul.f32 0.6931472, %v717_v59 }
 0x231   :  { %v505_v62 = vsub.f32 %v958_v54, %v475_v60 }
 0x232   :  { %v719_v63 = vpop.eup %718 }
 0x233   :  { %521 = vst [vmem:[%s1083_s5 + $0x8] sm:$0xff] %v505_v62  ;;  %v489_v0 = vmul.f32 0.6931472, %v719_v63  ;;  %v459_v2 = vpop.xlane.xlu1 %458  ;;  %v445_v3 = vpop.xlane.xlu0 %444 }
 0x234   :  { %720 = vlog2.f32 %v459_v2 }
 0x235   :  { %v512_v51 = vsub.f32 %v961_v58, %v489_v0  ;;  %722 = vlog2.f32 %v445_v3 }
 0x237   :  { %528 = vst [vmem:[%s1083_s5 + $0x40] sm:$0xff] %v512_v51 }
 0x23a   :  { %v721_v4 = vpop.eup %720 }
 0x23b   :  { %v723_v6 = vpop.eup %722  ;;  %v491_v7 = vmul.f32 0.6931472, %v721_v4  ;;  %v447_v54 = vpop.xlane.xlu1 %446 }
 0x23c   :  { %v477_v8 = vmul.f32 0.6931472, %v723_v6  ;;  %724 = vlog2.f32 %v447_v54 }
 0x23d   :  { %v513_v9 = vsub.f32 %v967_v1, %v491_v7 }
 0x23e   :  { %v506_v10 = vsub.f32 %v964_v61, %v477_v8 }
 0x23f   :  { %529 = vst [vmem:[%s1083_s5 + $0x48] sm:$0xff] %v513_v9  ;;  %v461_v58 = vpop.xlane.xlu2 %460 }
 0x240   :  { %522 = vst [vmem:[%s1083_s5 + $0x10] sm:$0xff] %v506_v10  ;;  %726 = vlog2.f32 %v461_v58 }
 0x242   :  { %v725_v12 = vpop.eup %724 }
 0x243   :  { %v479_v14 = vmul.f32 0.6931472, %v725_v12 }
 0x245   :  { %v507_v15 = vsub.f32 %v970_v5, %v479_v14 }
 0x246   :  { %v727_v17 = vpop.eup %726 }
 0x247   :  { %523 = vst [vmem:[%s1083_s5 + $0x18] sm:$0xff] %v507_v15  ;;  %v463_v61 = vpop.xlane.xlu0 %462  ;;  %v493_v1 = vmul.f32 0.6931472, %v727_v17 }
 0x248   :  { %v449_v18 = vpop.xlane.xlu2 %448  ;;  %728 = vlog2.f32 %v463_v61 }
 0x249   :  { %730 = vlog2.f32 %v449_v18  ;;  %v514_v19 = vsub.f32 %v974_v11, %v493_v1 }
 0x24b   :  { %v465_v20 = vpop.xlane.xlu1 %464  ;;  %530 = vst [vmem:[%s1083_s5 + $0x50] sm:$0xff] %v514_v19 }
 0x24c   :  { %732 = vlog2.f32 %v465_v20 }
 0x24e   :  { %v729_v22 = vpop.eup %728 }
 0x24f   :  { %v731_v5 = vpop.eup %730  ;;  %v495_v23 = vmul.f32 0.6931472, %v729_v22  ;;  %v451_v25 = vpop.xlane.xlu0 %450 }
 0x250   :  { %v481_v26 = vmul.f32 0.6931472, %v731_v5  ;;  %734 = vlog2.f32 %v451_v25 }
 0x251   :  { %v515_v27 = vsub.f32 %v981_v16, %v495_v23 }
 0x252   :  { %v733_v28 = vpop.eup %732  ;;  %v508_v30 = vsub.f32 %v978_v13, %v481_v26 }
 0x253   :  { %531 = vst [vmem:[%s1083_s5 + $0x58] sm:$0xff] %v515_v27  ;;  %v497_v11 = vmul.f32 0.6931472, %v733_v28  ;;  %v453_v31 = vpop.xlane.xlu1 %452 }
 0x254   :  { %524 = vst [vmem:[%s1083_s5 + $0x20] sm:$0xff] %v508_v30  ;;  %736 = vlog2.f32 %v453_v31 }
 0x255   :  { %v516_v32 = vsub.f32 %v986_v21, %v497_v11 }
 0x256   :  { %v735_v34 = vpop.eup %734 }
 0x257   :  { %532 = vst [vmem:[%s1083_s5 + $0x60] sm:$0xff] %v516_v32  ;;  %v483_v16 = vmul.f32 0.6931472, %v735_v34  ;;  %v455_v13 = vpop.xlane.xlu2 %454 }
 0x258   :  { %738 = vlog2.f32 %v455_v13 }
 0x259   :  { %v509_v35 = vsub.f32 %v990_v24, %v483_v16 }
 0x25a   :  { %v737_v36 = vpop.eup %736 }
 0x25b   :  { %525 = vst [vmem:[%s1083_s5 + $0x28] sm:$0xff] %v509_v35  ;;  %v485_v38 = vmul.f32 0.6931472, %v737_v36  ;;  %v469_v39 = vpop.xlane.xlu0 %468 }
 0x25c   :  { %740 = vlog2.f32 %v469_v39 }
 0x25d   :  { %v510_v21 = vsub.f32 %v994_v29, %v485_v38 }
 0x25e   :  { %v739_v40 = vpop.eup %738 }
 0x25f   :  { %526 = vst [vmem:[%s1083_s5 + $0x30] sm:$0xff] %v510_v21  ;;  %v487_v42 = vmul.f32 0.6931472, %v739_v40  ;;  %v467_v43 = vpop.xlane.xlu2 %466 }
 0x260   :  { %742 = vlog2.f32 %v467_v43 }
 0x261   :  { %v511_v24 = vsub.f32 %v998_v33, %v487_v42 }
 0x262   :  { %v741_v44 = vpop.eup %740 }
 0x263   :  { %527 = vst [vmem:[%s1083_s5 + $0x38] sm:$0xff] %v511_v24  ;;  %v501_v46 = vmul.f32 0.6931472, %v741_v44  ;;  %v471_v48 = vpop.xlane.xlu1 %470 }
 0x264   :  { %744 = vlog2.f32 %v471_v48 }
 0x265   :  { %v518_v29 = vsub.f32 %v1002_v37, %v501_v46 }
 0x266   :  { %v743_v50 = vpop.eup %742 }
 0x267   :  { %534 = vst [vmem:[%s1083_s5 + $0x70] sm:$0xff] %v518_v29  ;;  %v499_v52 = vmul.f32 0.6931472, %v743_v50 }
 0x269   :  { %v517_v47 = vsub.f32 %v1006_v41, %v499_v52 }
 0x26a   :  { %v745_v53 = vpop.eup %744 }
 0x26b   :  { %533 = vst [vmem:[%s1083_s5 + $0x68] sm:$0xff] %v517_v47  ;;  %v503_v33 = vmul.f32 0.6931472, %v745_v53 }
 0x26d   :  { %v519_v55 = vsub.f32 %v1010_v45, %v503_v33 }
 0x26f   :  { %535 = vst [vmem:[%s1083_s5 + $0x78] sm:$0xff] %v519_v55 }

// kernel: gcn_forward_padded.2
= control target key start
LH: loop header
LB: loop body
LE: loop exit
PB: predicated region body
PF: predicated region fallthrough
CT: control target
= control target key end

     0   :  { %10 = vsyncpa [#allocation3], 0  ;;  %s1363_s0 = inlined_call_operand.hbm [shape: bf16[128,128], index: 0, kind: input, shape index: {}]   ;;  %s1364_s1 = inlined_call_operand.hbm [shape: bf16[128,128], index: 1, kind: input, shape index: {}]   ;;  %s1365_s2 = inlined_call_operand.hbm [shape: bf16[128,256], index: 2, kind: input, shape index: {}]   ;;  %s1366_s3 = inlined_call_operand.hbm [shape: f32[1,256], index: 3, kind: input, shape index: {}]   ;;  %s1367_s4 = inlined_call_operand.hbm [shape: bf16[256,128], index: 4, kind: input, shape index: {}]   ;;  %s1368_s5 = inlined_call_operand.vmem [shape: bf16[128,128], index: 5, kind: output, shape index: {}]  }
   0x1   :  { %11 = vsyncpa [#allocation5], 0 }
   0x2   :  { %12 = vsyncpa [#allocation8], 0  ;;  %s30_s20 = sshll.u32 %s1364_s1, 4  ;;  %s1240_s21 = smov [#allocation4]   ;;  %s31_s20 = int_to_ptr.hbm [resolvable:$true] %s30_s20 }
   0x3   :  { %s32_s22 = sshll.u32 %s1240_s21, 4  ;;  %s57_s25 = sshll.u32 %s1366_s3, 4  ;;  %s33_s22 = int_to_ptr.vmem [resolvable:$true] %s32_s22  ;;  %s58_s25 = int_to_ptr.hbm [resolvable:$true] %s57_s25 }
   0x4   :  { %s1241_s26 = smov 64   ;;  %s1242_s27 = smov 4  }
   0x5   :  { %38 = dma.hbm_to_vmem [thread:$0]  %s31_s20, 1024, %s33_s22, [#allocation5], %s1241_s26, %s1241_s26, %s1242_s27  }
   0x6   :  { %s1243_s28 = smov [#allocation7]   ;;  %s17_s1 = sshll.u32 %s1363_s0, 4  ;;  %s18_s1 = int_to_ptr.hbm [resolvable:$true] %s17_s1 }
   0x7   :  { %s59_s29 = sshll.u32 %s1243_s28, 4  ;;  %s43_s3 = sshll.u32 %s1365_s2, 4  ;;  %s60_s29 = int_to_ptr.vmem [resolvable:$true] %s59_s29  ;;  %s44_s3 = int_to_ptr.hbm [resolvable:$true] %s43_s3 }
   0x8   :  { %62 = dma.hbm_to_vmem [thread:$0]  %s58_s25, 32, %s60_s29, [#allocation8]  }
   0x9   :  { %s1244_s9 = smov [#allocation2]   ;;  %s1245_s11 = smov [#allocation6]  }
   0xa   :  { %s19_s10 = sshll.u32 %s1244_s9, 4  ;;  %s45_s12 = sshll.u32 %s1245_s11, 4  ;;  %s20_s10 = int_to_ptr.vmem [resolvable:$true] %s19_s10  ;;  %s46_s12 = int_to_ptr.vmem [resolvable:$true] %s45_s12 }
   0xb   :  { %25 = dma.hbm_to_vmem [thread:$0]  %s18_s1, 1024, %s20_s10, [#allocation3], %s1241_s26, %s1241_s26, %s1242_s27  }
   0xc   :  { %s1246_s13 = smov 128   ;;  %s1247_s0 = smov 8  }
   0xd   :  { %51 = dma.hbm_to_vmem [thread:$0]  %s44_s3, 2048, %s46_s12, [#allocation5], %s1246_s13, %s1246_s13, %s1247_s0  }
   0xe   :  { %s67_s16 = sshll.u32 %s1367_s4, 4  ;;  %s1248_s2 = smov [#allocation9]   ;;  %s68_s16 = int_to_ptr.hbm [resolvable:$true] %s67_s16 }
   0xf   :  { %s69_s17 = sshll.u32 %s1248_s2, 4  ;;  %s70_s17 = int_to_ptr.vmem [resolvable:$true] %s69_s17 }
  0x10   :  { %75 = dma.hbm_to_vmem [thread:$0]  %s68_s16, 2048, %s70_s17, [#allocation8], %s1241_s26, %s1241_s26, %s1242_s27  }
  0x11   :  { %1234 = dma.done.wait [#allocation3], 1024  }
  0x12   :  { %1235 = vsyncadd [#allocation3], 4294966272 }
  0x13   :  { %1236 = dma.done.wait [#allocation5], 3072  }
  0x14   :  { %1237 = vsyncadd [#allocation5], 4294964224 }
  0x15   :  { %1238 = dma.done.wait [#allocation8], 2080  }
  0x16   :  { %1239 = vsyncadd [#allocation8], 4294965216  ;;  %v1001_v0 = vld [vmem:[#allocation4 + $0x38] sm:$0xff]  ;;  %v1000_v1 = vld [vmem:[#allocation4 + $0x30] sm:$0xff] }
  0x17   :  { %224 = vmatpush.bf16.msra.mxu0 %v1001_v0  ;;  %1081 = vmatpush.bf16.msra.mxu1 %v1001_v0  ;;  %v999_v2 = vld [vmem:[#allocation4 + $0x28] sm:$0xff]  ;;  %v998_v3 = vld [vmem:[#allocation4 + $0x20] sm:$0xff]  ;;  %v997_v4 = vld [vmem:[#allocation4 + $0x18] sm:$0xff] }
  0x18   :  { %1082 = vmatpush.bf16.msra.mxu2 %v1001_v0  ;;  %1083 = vmatpush.bf16.msra.mxu3 %v1001_v0  ;;  %v996_v5 = vld [vmem:[#allocation4 + $0x10] sm:$0xff]  ;;  %v995_v6 = vld [vmem:[#allocation4 + $0x8] sm:$0xff]  ;;  %v1017_v8 = vld [vmem:[#allocation6 + $0x74] sm:$0xf0] }
  0x19   :  { %v916_v7 = vld [vmem:[#allocation6 + $0x70] sm:$0xf]  ;;  %v1016_v9 = vld [vmem:[#allocation6 + $0x74] sm:$0xf]  ;;  %v918_v10 = vld [vmem:[#allocation6 + $0x78] sm:$0xf0] }
  0x1a   :  { %v994_v11 = vld [vmem:[#allocation4] sm:$0xff]  ;;  %v988_v13 = vld [vmem:[#allocation2 + $0x10] sm:$0xff]  ;;  %v917_v14 = vor.u32 %v1017_v8, %v916_v7  ;;  %v921_v15 = vor.u32 %v1016_v9, %v918_v10  ;;  %v1015_v17 = vld [vmem:[#allocation6 + $0x64] sm:$0xf0] }
  0x1b   :  { %225 = vmatpush.bf16.msra.mxu0 %v1000_v1  ;;  %1084 = vmatpush.bf16.msra.mxu1 %v1000_v1  ;;  %v986_v12 = vld [vmem:[#allocation2] sm:$0xff]  ;;  %v910_v19 = vld [vmem:[#allocation6 + $0x68] sm:$0xf0]  ;;  %v992_v21 = vld [vmem:[#allocation2 + $0x30] sm:$0xff] }
  0x1c   :  { %1085 = vmatpush.bf16.msra.mxu2 %v1000_v1  ;;  %1086 = vmatpush.bf16.msra.mxu3 %v1000_v1  ;;  %v908_v16 = vld [vmem:[#allocation6 + $0x60] sm:$0xf]  ;;  %v1014_v18 = vld [vmem:[#allocation6 + $0x64] sm:$0xf]  ;;  %v900_v24 = vld [vmem:[#allocation6 + $0x50] sm:$0xf] }
  0x1d   :  { %v990_v20 = vld [vmem:[#allocation2 + $0x20] sm:$0xff]  ;;  %v909_v22 = vor.u32 %v1015_v17, %v908_v16  ;;  %v913_v23 = vor.u32 %v1014_v18, %v910_v19  ;;  %v1013_v25 = vld [vmem:[#allocation6 + $0x54] sm:$0xf0]  ;;  %v1012_v26 = vld [vmem:[#allocation6 + $0x54] sm:$0xf] }
  0x1e   :  { %v902_v27 = vld [vmem:[#allocation6 + $0x58] sm:$0xf0]  ;;  %v901_v28 = vor.u32 %v1013_v25, %v900_v24  ;;  %v892_v30 = vld [vmem:[#allocation6 + $0x40] sm:$0xf]  ;;  %v1011_v31 = vld [vmem:[#allocation6 + $0x44] sm:$0xf0] }
  0x1f   :  { %226 = vmatpush.bf16.msra.mxu0 %v999_v2  ;;  %1087 = vmatpush.bf16.msra.mxu1 %v999_v2  ;;  %v905_v29 = vor.u32 %v1012_v26, %v902_v27  ;;  %v1010_v32 = vld [vmem:[#allocation6 + $0x44] sm:$0xf]  ;;  %v894_v33 = vld [vmem:[#allocation6 + $0x48] sm:$0xf0]  ;;  %v893_v34 = vor.u32 %v1011_v31, %v892_v30  ;;  %v884_v36 = vld [vmem:[#allocation6 + $0x30] sm:$0xf] }
  0x20   :  { %1088 = vmatpush.bf16.msra.mxu2 %v999_v2  ;;  %1089 = vmatpush.bf16.msra.mxu3 %v999_v2  ;;  %v897_v35 = vor.u32 %v1010_v32, %v894_v33  ;;  %v1009_v37 = vld [vmem:[#allocation6 + $0x34] sm:$0xf0]  ;;  %v1008_v38 = vld [vmem:[#allocation6 + $0x34] sm:$0xf]  ;;  %v886_v39 = vld [vmem:[#allocation6 + $0x38] sm:$0xf0] }
  0x21   :  { %v987_v40 = vld [vmem:[#allocation2 + $0x8] sm:$0xff]  ;;  %v989_v41 = vld [vmem:[#allocation2 + $0x18] sm:$0xff]  ;;  %v885_v42 = vor.u32 %v1009_v37, %v884_v36  ;;  %v889_v43 = vor.u32 %v1008_v38, %v886_v39  ;;  %v876_v44 = vld [vmem:[#allocation6 + $0x20] sm:$0xf] }
  0x22   :  { %v1007_v45 = vld [vmem:[#allocation6 + $0x24] sm:$0xf0]  ;;  %v1006_v46 = vld [vmem:[#allocation6 + $0x24] sm:$0xf]  ;;  %v878_v47 = vld [vmem:[#allocation6 + $0x28] sm:$0xf0] }
  0x23   :  { %227 = vmatpush.bf16.msra.mxu0 %v998_v3  ;;  %1090 = vmatpush.bf16.msra.mxu1 %v998_v3  ;;  %v991_v48 = vld [vmem:[#allocation2 + $0x28] sm:$0xff]  ;;  %v993_v49 = vld [vmem:[#allocation2 + $0x38] sm:$0xff]  ;;  %v877_v50 = vor.u32 %v1007_v45, %v876_v44  ;;  %v881_v51 = vor.u32 %v1006_v46, %v878_v47  ;;  %v868_v52 = vld [vmem:[#allocation6 + $0x10] sm:$0xf] }
  0x24   :  { %1091 = vmatpush.bf16.msra.mxu2 %v998_v3  ;;  %1092 = vmatpush.bf16.msra.mxu3 %v998_v3  ;;  %v1005_v53 = vld [vmem:[#allocation6 + $0x14] sm:$0xf0]  ;;  %v1004_v54 = vld [vmem:[#allocation6 + $0x14] sm:$0xf]  ;;  %v870_v56 = vld [vmem:[#allocation6 + $0x18] sm:$0xf0] }
  0x25   :  { %v869_v55 = vor.u32 %v1005_v53, %v868_v52  ;;  %v860_v57 = vld [vmem:[#allocation6] sm:$0xf]  ;;  %v1003_v58 = vld [vmem:[#allocation6 + $0x4] sm:$0xf0]  ;;  %v873_v59 = vor.u32 %v1004_v54, %v870_v56  ;;  %v1002_v60 = vld [vmem:[#allocation6 + $0x4] sm:$0xf] }
  0x26   :  { %v862_v61 = vld [vmem:[#allocation6 + $0x8] sm:$0xf0]  ;;  %v861_v62 = vor.u32 %v1003_v58, %v860_v57  ;;  %v1022_v24 = vld [vmem:[#allocation9 + $0x20] sm:$0xff]  ;;  %v1021_v27 = vld [vmem:[#allocation9 + $0x18] sm:$0xff] }
  0x27   :  { %228 = vmatpush.bf16.msra.mxu0 %v997_v4  ;;  %1093 = vmatpush.bf16.msra.mxu1 %v997_v4  ;;  %v865_v63 = vor.u32 %v1002_v60, %v862_v61  ;;  %v1031_v25 = vld [vmem:[#allocation9 + $0x68] sm:$0xff]  ;;  %v1020_v30 = vld [vmem:[#allocation9 + $0x10] sm:$0xff]  ;;  %v1029_v31 = vld [vmem:[#allocation9 + $0x58] sm:$0xff] }
  0x28   :  { %1094 = vmatpush.bf16.msra.mxu2 %v997_v4  ;;  %1095 = vmatpush.bf16.msra.mxu3 %v997_v4  ;;  %v1019_v33 = vld [vmem:[#allocation9 + $0x8] sm:$0xff]  ;;  %v1026_v38 = vld [vmem:[#allocation9 + $0x40] sm:$0xff] }
  0x29   :  { %v1027_v36 = vld [vmem:[#allocation9 + $0x48] sm:$0xff] }
  0x2b   :  { %229 = vmatpush.bf16.msra.mxu0 %v996_v5  ;;  %1096 = vmatpush.bf16.msra.mxu1 %v996_v5 }
  0x2c   :  { %1097 = vmatpush.bf16.msra.mxu2 %v996_v5  ;;  %1098 = vmatpush.bf16.msra.mxu3 %v996_v5 }
  0x2f   :  { %230 = vmatpush.bf16.msra.mxu0 %v995_v6  ;;  %1099 = vmatpush.bf16.msra.mxu1 %v995_v6 }
  0x30   :  { %1100 = vmatpush.bf16.msra.mxu2 %v995_v6  ;;  %1101 = vmatpush.bf16.msra.mxu3 %v995_v6 }
  0x33   :  { %231 = vmatpush.bf16.msra.mxu0 %v994_v11  ;;  %1102 = vmatpush.bf16.msra.mxu1 %v994_v11 }
  0x34   :  { %1103 = vmatpush.bf16.msra.mxu2 %v994_v11  ;;  %1104 = vmatpush.bf16.msra.mxu3 %v994_v11 }
  0x36   :  { %232 = vmatmul.bf16.vlgmr.msra.gmra.mxu0 %v986_v12  ;;  %242 = vmatmul.bf16.vlgmr.msra.gmra.mxu1 %v988_v13 }
  0x37   :  { %383 = vmatpush.bf16.msrb.mxu1 %v917_v14  ;;  %252 = vmatmul.bf16.vlgmr.msra.gmra.mxu2 %v990_v20  ;;  %v1024_v20 = vld [vmem:[#allocation9 + $0x30] sm:$0xff] }
  0x38   :  { %432 = vmatpush.bf16.msrb.mxu2 %v921_v15  ;;  %262 = vmatmul.bf16.vlgmr.msra.gmra.mxu3 %v992_v21  ;;  %v1025_v15 = vld [vmem:[#allocation9 + $0x38] sm:$0xff] }
  0x39   :  { %657 = vmatpush.bf16.msrb.mxu3 %v1025_v15  ;;  %v1033_v21 = vld [vmem:[#allocation9 + $0x78] sm:$0xff] }
  0x3a   :  { %706 = vmatpush.bf16.msrb.mxu0 %v1033_v21 }
  0x3b   :  { %384 = vmatpush.bf16.msrb.mxu1 %v909_v22  ;;  %v1023_v22 = vld [vmem:[#allocation9 + $0x28] sm:$0xff] }
  0x3c   :  { %433 = vmatpush.bf16.msrb.mxu2 %v913_v23  ;;  %v1032_v23 = vld [vmem:[#allocation9 + $0x70] sm:$0xff] }
  0x3d   :  { %658 = vmatpush.bf16.msrb.mxu3 %v1024_v20 }
  0x3e   :  { %707 = vmatpush.bf16.msrb.mxu0 %v1032_v23 }
  0x3f   :  { %385 = vmatpush.bf16.msrb.mxu1 %v901_v28  ;;  %v1030_v28 = vld [vmem:[#allocation9 + $0x60] sm:$0xff] }
  0x40   :  { %434 = vmatpush.bf16.msrb.mxu2 %v905_v29 }
  0x41   :  { %659 = vmatpush.bf16.msrb.mxu3 %v1023_v22 }
  0x42   :  { %708 = vmatpush.bf16.msrb.mxu0 %v1031_v25 }
  0x43   :  { %386 = vmatpush.bf16.msrb.mxu1 %v893_v34  ;;  %v1028_v34 = vld [vmem:[#allocation9 + $0x50] sm:$0xff] }
  0x44   :  { %435 = vmatpush.bf16.msrb.mxu2 %v897_v35  ;;  %v1018_v35 = vld [vmem:[#allocation9] sm:$0xff] }
  0x45   :  { %660 = vmatpush.bf16.msrb.mxu3 %v1022_v24 }
  0x46   :  { %237 = vmatmul.bf16.gmra.mxu0 %v987_v40  ;;  %247 = vmatmul.bf16.gmra.mxu1 %v989_v41  ;;  %v297_v40 = vld [vmem:[#allocation7] sm:$0x3] }
  0x47   :  { %387 = vmatpush.bf16.msrb.mxu1 %v885_v42  ;;  %257 = vmatmul.bf16.gmra.mxu2 %v991_v48  ;;  %v1303_v42 = vperm.slane %v297_v40, 0  ;;  %v1306_v46 = vperm.slane %v297_v40, 1 }
  0x48   :  { %436 = vmatpush.bf16.msrb.mxu2 %v889_v43  ;;  %267 = vmatmul.bf16.gmra.mxu3 %v993_v49 }
  0x49   :  { %661 = vmatpush.bf16.msrb.mxu3 %v1021_v27  ;;  %709 = vmatpush.bf16.msrb.mxu0 %v1030_v28 }
  0x4b   :  { %388 = vmatpush.bf16.msrb.mxu1 %v877_v50 }
  0x4c   :  { %437 = vmatpush.bf16.msrb.mxu2 %v881_v51 }
  0x4d   :  { %662 = vmatpush.bf16.msrb.mxu3 %v1020_v30  ;;  %710 = vmatpush.bf16.msrb.mxu0 %v1029_v31 }
  0x4f   :  { %389 = vmatpush.bf16.msrb.mxu1 %v869_v55 }
  0x50   :  { %438 = vmatpush.bf16.msrb.mxu2 %v873_v59 }
  0x51   :  { %663 = vmatpush.bf16.msrb.mxu3 %v1019_v33  ;;  %711 = vmatpush.bf16.msrb.mxu0 %v1028_v34 }
  0x53   :  { %390 = vmatpush.bf16.msrb.mxu1 %v861_v62 }
  0x54   :  { %439 = vmatpush.bf16.msrb.mxu2 %v865_v63 }
  0x55   :  { %664 = vmatpush.bf16.msrb.mxu3 %v1018_v35  ;;  %712 = vmatpush.bf16.msrb.mxu0 %v1027_v36 }
  0x59   :  { %713 = vmatpush.bf16.msrb.mxu0 %v1026_v38 }
  0xb3   :  { %v233_v0 = vpop.f32.mrf.mxu0  ;;  %v243_v5 = vpop.f32.mrf.mxu1 }
  0xba   :  { %v253_v11 = vpop.f32.mrf.mxu2 }
  0xbb   :  { %v235_v1 = vpop.f32.mrf.mxu0  ;;  %v245_v7 = vpop.f32.mrf.mxu1 }
  0xbc   :  { %v273_v2 = vpack.c.bf16 %v235_v1, %v233_v0  ;;  %v275_v8 = vpack.c.bf16 %v245_v7, %v243_v5  ;;  %v263_v18 = vpop.f32.mrf.mxu3 }
  0xbe   :  { %391 = vmatmul.bf16.vlgmr.msrb.gmra.mxu1 %v273_v2  ;;  %440 = vmatmul.bf16.vlgmr.msrb.gmra.mxu2 %v273_v2 }
  0xc2   :  { %v255_v13 = vpop.f32.mrf.mxu2 }
  0xc3   :  { %v238_v3 = vpop.f32.mrf.mxu0  ;;  %v248_v9 = vpop.f32.mrf.mxu1  ;;  %v277_v14 = vpack.c.bf16 %v255_v13, %v253_v11 }
  0xc4   :  { %v265_v26 = vpop.f32.mrf.mxu3 }
  0xc5   :  { %v279_v29 = vpack.c.bf16 %v265_v26, %v263_v18 }
  0xca   :  { %v258_v16 = vpop.f32.mrf.mxu2 }
  0xcb   :  { %v240_v4 = vpop.f32.mrf.mxu0  ;;  %v250_v10 = vpop.f32.mrf.mxu1 }
  0xcc   :  { %v274_v6 = vpack.c.bf16 %v240_v4, %v238_v3  ;;  %v276_v12 = vpack.c.bf16 %v250_v10, %v248_v9  ;;  %v268_v32 = vpop.f32.mrf.mxu3 }
  0xce   :  { %396 = vmatmul.bf16.gmra.mxu1 %v274_v6  ;;  %445 = vmatmul.bf16.gmra.mxu2 %v274_v6 }
  0xd2   :  { %v260_v17 = vpop.f32.mrf.mxu2 }
  0xd3   :  { %v278_v19 = vpack.c.bf16 %v260_v17, %v258_v16 }
  0xd4   :  { %v270_v37 = vpop.f32.mrf.mxu3 }
  0xd5   :  { %v280_v39 = vpack.c.bf16 %v270_v37, %v268_v32 }
  0xde   :  { %401 = vmatmul.bf16.gmra.mxu1 %v275_v8  ;;  %450 = vmatmul.bf16.gmra.mxu2 %v275_v8 }
  0xee   :  { %406 = vmatmul.bf16.gmra.mxu1 %v276_v12  ;;  %455 = vmatmul.bf16.gmra.mxu2 %v276_v12 }
  0xfe   :  { %411 = vmatmul.bf16.gmra.mxu1 %v277_v14  ;;  %460 = vmatmul.bf16.gmra.mxu2 %v277_v14 }
 0x10e   :  { %416 = vmatmul.bf16.gmra.mxu1 %v278_v19  ;;  %465 = vmatmul.bf16.gmra.mxu2 %v278_v19 }
 0x11e   :  { %421 = vmatmul.bf16.gmra.mxu1 %v279_v29  ;;  %470 = vmatmul.bf16.gmra.mxu2 %v279_v29 }
 0x12e   :  { %426 = vmatmul.bf16.gmra.mxu1 %v280_v39  ;;  %475 = vmatmul.bf16.gmra.mxu2 %v280_v39 }
 0x13b   :  { %v392_v41 = vpop.f32.mrf.mxu1 }
 0x13c   :  { %v393_v44 = vadd.f32 %v392_v41, %v1303_v42 }
 0x13e   :  { %v481_v48 = vmax.f32 %v393_v44, 0.0 }
 0x141   :  { %v441_v43 = vpop.f32.mrf.mxu2 }
 0x142   :  { %v442_v50 = vadd.f32 %v441_v43, %v1306_v46 }
 0x143   :  { %v394_v45 = vpop.f32.mrf.mxu1 }
 0x144   :  { %v395_v47 = vadd.f32 %v394_v45, %v1303_v42  ;;  %v482_v55 = vmax.f32 %v442_v50, 0.0 }
 0x146   :  { %v483_v49 = vmax.f32 %v395_v47, 0.0 }
 0x148   :  { %v513_v51 = vpack.c.bf16 %v483_v49, %v481_v48 }
 0x149   :  { %v443_v52 = vpop.f32.mrf.mxu2 }
 0x14a   :  { %v444_v53 = vadd.f32 %v443_v52, %v1306_v46  ;;  %665 = vmatmul.bf16.vlgmr.msrb.gmra.mxu3 %v513_v51 }
 0x14b   :  { %v397_v54 = vpop.f32.mrf.mxu1 }
 0x14c   :  { %v484_v56 = vmax.f32 %v444_v53, 0.0  ;;  %v398_v59 = vadd.f32 %v397_v54, %v1303_v42 }
 0x14e   :  { %v514_v57 = vpack.c.bf16 %v484_v56, %v482_v55  ;;  %v485_v62 = vmax.f32 %v398_v59, 0.0 }
 0x150   :  { %714 = vmatmul.bf16.vlgmr.msrb.gmra.mxu0 %v514_v57 }
 0x151   :  { %v446_v58 = vpop.f32.mrf.mxu2 }
 0x152   :  { %v447_v0 = vadd.f32 %v446_v58, %v1306_v46 }
 0x153   :  { %v399_v60 = vpop.f32.mrf.mxu1 }
 0x154   :  { %v400_v61 = vadd.f32 %v399_v60, %v1303_v42  ;;  %v486_v5 = vmax.f32 %v447_v0, 0.0 }
 0x156   :  { %v487_v63 = vmax.f32 %v400_v61, 0.0 }
 0x158   :  { %v515_v1 = vpack.c.bf16 %v487_v63, %v485_v62 }
 0x159   :  { %v448_v2 = vpop.f32.mrf.mxu2 }
 0x15a   :  { %v449_v3 = vadd.f32 %v448_v2, %v1306_v46  ;;  %670 = vmatmul.bf16.gmra.mxu3 %v515_v1 }
 0x15b   :  { %v402_v4 = vpop.f32.mrf.mxu1 }
 0x15c   :  { %v488_v6 = vmax.f32 %v449_v3, 0.0  ;;  %v403_v9 = vadd.f32 %v402_v4, %v1303_v42 }
 0x15e   :  { %v516_v7 = vpack.c.bf16 %v488_v6, %v486_v5  ;;  %v489_v12 = vmax.f32 %v403_v9, 0.0 }
 0x160   :  { %719 = vmatmul.bf16.gmra.mxu0 %v516_v7 }
 0x161   :  { %v451_v8 = vpop.f32.mrf.mxu2 }
 0x162   :  { %v452_v14 = vadd.f32 %v451_v8, %v1306_v46 }
 0x163   :  { %v404_v10 = vpop.f32.mrf.mxu1 }
 0x164   :  { %v405_v11 = vadd.f32 %v404_v10, %v1303_v42  ;;  %v490_v19 = vmax.f32 %v452_v14, 0.0 }
 0x166   :  { %v491_v13 = vmax.f32 %v405_v11, 0.0 }
 0x168   :  { %v517_v15 = vpack.c.bf16 %v491_v13, %v489_v12 }
 0x169   :  { %v453_v16 = vpop.f32.mrf.mxu2 }
 0x16a   :  { %v454_v17 = vadd.f32 %v453_v16, %v1306_v46  ;;  %675 = vmatmul.bf16.gmra.mxu3 %v517_v15 }
 0x16b   :  { %v407_v18 = vpop.f32.mrf.mxu1 }
 0x16c   :  { %v492_v20 = vmax.f32 %v454_v17, 0.0  ;;  %v408_v23 = vadd.f32 %v407_v18, %v1303_v42 }
 0x16e   :  { %v518_v21 = vpack.c.bf16 %v492_v20, %v490_v19  ;;  %v493_v26 = vmax.f32 %v408_v23, 0.0 }
 0x170   :  { %724 = vmatmul.bf16.gmra.mxu0 %v518_v21 }
 0x171   :  { %v456_v22 = vpop.f32.mrf.mxu2 }
 0x172   :  { %v457_v28 = vadd.f32 %v456_v22, %v1306_v46 }
 0x173   :  { %v409_v24 = vpop.f32.mrf.mxu1 }
 0x174   :  { %v410_v25 = vadd.f32 %v409_v24, %v1303_v42  ;;  %v494_v33 = vmax.f32 %v457_v28, 0.0 }
 0x176   :  { %v495_v27 = vmax.f32 %v410_v25, 0.0 }
 0x178   :  { %v519_v29 = vpack.c.bf16 %v495_v27, %v493_v26 }
 0x179   :  { %v458_v30 = vpop.f32.mrf.mxu2 }
 0x17a   :  { %v459_v31 = vadd.f32 %v458_v30, %v1306_v46  ;;  %680 = vmatmul.bf16.gmra.mxu3 %v519_v29 }
 0x17b   :  { %v412_v32 = vpop.f32.mrf.mxu1 }
 0x17c   :  { %v496_v34 = vmax.f32 %v459_v31, 0.0  ;;  %v413_v37 = vadd.f32 %v412_v32, %v1303_v42 }
 0x17e   :  { %v520_v35 = vpack.c.bf16 %v496_v34, %v494_v33  ;;  %v497_v40 = vmax.f32 %v413_v37, 0.0 }
 0x180   :  { %729 = vmatmul.bf16.gmra.mxu0 %v520_v35 }
 0x181   :  { %v461_v36 = vpop.f32.mrf.mxu2 }
 0x182   :  { %v462_v43 = vadd.f32 %v461_v36, %v1306_v46 }
 0x183   :  { %v414_v38 = vpop.f32.mrf.mxu1 }
 0x184   :  { %v415_v39 = vadd.f32 %v414_v38, %v1303_v42  ;;  %v498_v49 = vmax.f32 %v462_v43, 0.0 }
 0x186   :  { %v499_v41 = vmax.f32 %v415_v39, 0.0 }
 0x188   :  { %v521_v44 = vpack.c.bf16 %v499_v41, %v497_v40 }
 0x189   :  { %v463_v45 = vpop.f32.mrf.mxu2 }
 0x18a   :  { %v464_v47 = vadd.f32 %v463_v45, %v1306_v46  ;;  %685 = vmatmul.bf16.gmra.mxu3 %v521_v44 }
 0x18b   :  { %v417_v48 = vpop.f32.mrf.mxu1 }
 0x18c   :  { %v500_v50 = vmax.f32 %v464_v47, 0.0  ;;  %v418_v53 = vadd.f32 %v417_v48, %v1303_v42 }
 0x18e   :  { %v522_v51 = vpack.c.bf16 %v500_v50, %v498_v49  ;;  %v501_v56 = vmax.f32 %v418_v53, 0.0 }
 0x190   :  { %734 = vmatmul.bf16.gmra.mxu0 %v522_v51 }
 0x191   :  { %v466_v52 = vpop.f32.mrf.mxu2 }
 0x192   :  { %v467_v58 = vadd.f32 %v466_v52, %v1306_v46 }
 0x193   :  { %v419_v54 = vpop.f32.mrf.mxu1 }
 0x194   :  { %v420_v55 = vadd.f32 %v419_v54, %v1303_v42  ;;  %v502_v63 = vmax.f32 %v467_v58, 0.0 }
 0x196   :  { %v503_v57 = vmax.f32 %v420_v55, 0.0 }
 0x198   :  { %v523_v59 = vpack.c.bf16 %v503_v57, %v501_v56 }
 0x199   :  { %v468_v60 = vpop.f32.mrf.mxu2 }
 0x19a   :  { %v469_v61 = vadd.f32 %v468_v60, %v1306_v46  ;;  %690 = vmatmul.bf16.gmra.mxu3 %v523_v59 }
 0x19b   :  { %v422_v62 = vpop.f32.mrf.mxu1 }
 0x19c   :  { %v504_v0 = vmax.f32 %v469_v61, 0.0  ;;  %v423_v3 = vadd.f32 %v422_v62, %v1303_v42 }
 0x19e   :  { %v524_v1 = vpack.c.bf16 %v504_v0, %v502_v63  ;;  %v505_v6 = vmax.f32 %v423_v3, 0.0 }
 0x1a0   :  { %739 = vmatmul.bf16.gmra.mxu0 %v524_v1 }
 0x1a1   :  { %v471_v2 = vpop.f32.mrf.mxu2 }
 0x1a2   :  { %v472_v8 = vadd.f32 %v471_v2, %v1306_v46 }
 0x1a3   :  { %v424_v4 = vpop.f32.mrf.mxu1 }
 0x1a4   :  { %v425_v5 = vadd.f32 %v424_v4, %v1303_v42  ;;  %v506_v13 = vmax.f32 %v472_v8, 0.0 }
 0x1a6   :  { %v507_v7 = vmax.f32 %v425_v5, 0.0 }
 0x1a8   :  { %v525_v9 = vpack.c.bf16 %v507_v7, %v505_v6 }
 0x1a9   :  { %v473_v10 = vpop.f32.mrf.mxu2 }
 0x1aa   :  { %v474_v11 = vadd.f32 %v473_v10, %v1306_v46  ;;  %695 = vmatmul.bf16.gmra.mxu3 %v525_v9 }
 0x1ab   :  { %v427_v12 = vpop.f32.mrf.mxu1 }
 0x1ac   :  { %v508_v14 = vmax.f32 %v474_v11, 0.0  ;;  %v428_v17 = vadd.f32 %v427_v12, %v1303_v42 }
 0x1ae   :  { %v526_v15 = vpack.c.bf16 %v508_v14, %v506_v13  ;;  %v509_v20 = vmax.f32 %v428_v17, 0.0 }
 0x1b0   :  { %744 = vmatmul.bf16.gmra.mxu0 %v526_v15 }
 0x1b1   :  { %v476_v16 = vpop.f32.mrf.mxu2 }
 0x1b2   :  { %v477_v22 = vadd.f32 %v476_v16, %v1306_v46 }
 0x1b3   :  { %v429_v18 = vpop.f32.mrf.mxu1 }
 0x1b4   :  { %v430_v19 = vadd.f32 %v429_v18, %v1303_v42  ;;  %v510_v26 = vmax.f32 %v477_v22, 0.0 }
 0x1b6   :  { %v511_v21 = vmax.f32 %v430_v19, 0.0 }
 0x1b8   :  { %v527_v23 = vpack.c.bf16 %v511_v21, %v509_v20 }
 0x1b9   :  { %v478_v24 = vpop.f32.mrf.mxu2 }
 0x1ba   :  { %v479_v25 = vadd.f32 %v478_v24, %v1306_v46  ;;  %700 = vmatmul.bf16.gmra.mxu3 %v527_v23 }
 0x1bc   :  { %v512_v27 = vmax.f32 %v479_v25, 0.0 }
 0x1be   :  { %v528_v28 = vpack.c.bf16 %v512_v27, %v510_v26 }
 0x1c0   :  { %749 = vmatmul.bf16.gmra.mxu0 %v528_v28 }
 0x1cd   :  { %v666_v29 = vpop.f32.mrf.mxu3  ;;  %v715_v30 = vpop.f32.mrf.mxu0 }
 0x1ce   :  { %v716_v33 = vadd.f32 %v715_v30, %v666_v29 }
 0x1d5   :  { %v668_v31 = vpop.f32.mrf.mxu3  ;;  %v717_v32 = vpop.f32.mrf.mxu0 }
 0x1d6   :  { %v718_v34 = vadd.f32 %v717_v32, %v668_v31 }
 0x1d8   :  { %v1037_v42 = vpack.c.bf16 %v718_v34, %v716_v33 }
 0x1da   :  { %1038 = vst [vmem:[%s1368_s5] sm:$0xff] %v1037_v42  }
 0x1dd   :  { %v671_v35 = vpop.f32.mrf.mxu3  ;;  %v720_v36 = vpop.f32.mrf.mxu0 }
 0x1de   :  { %v721_v38 = vadd.f32 %v720_v36, %v671_v35 }
 0x1e5   :  { %v673_v37 = vpop.f32.mrf.mxu3  ;;  %v722_v46 = vpop.f32.mrf.mxu0 }
 0x1e6   :  { %v723_v39 = vadd.f32 %v722_v46, %v673_v37 }
 0x1e8   :  { %v1042_v40 = vpack.c.bf16 %v723_v39, %v721_v38 }
 0x1ea   :  { %1074 = vst [vmem:[%s1368_s5 + $0x8] sm:$0xff] %v1042_v40  }
 0x1ed   :  { %v676_v41 = vpop.f32.mrf.mxu3  ;;  %v725_v43 = vpop.f32.mrf.mxu0 }
 0x1ee   :  { %v726_v47 = vadd.f32 %v725_v43, %v676_v41 }
 0x1f5   :  { %v678_v44 = vpop.f32.mrf.mxu3  ;;  %v727_v45 = vpop.f32.mrf.mxu0 }
 0x1f6   :  { %v728_v48 = vadd.f32 %v727_v45, %v678_v44 }
 0x1f8   :  { %v1047_v49 = vpack.c.bf16 %v728_v48, %v726_v47 }
 0x1fa   :  { %1075 = vst [vmem:[%s1368_s5 + $0x10] sm:$0xff] %v1047_v49  }
 0x1fd   :  { %v681_v50 = vpop.f32.mrf.mxu3  ;;  %v730_v51 = vpop.f32.mrf.mxu0 }
 0x1fe   :  { %v731_v54 = vadd.f32 %v730_v51, %v681_v50 }
 0x205   :  { %v683_v52 = vpop.f32.mrf.mxu3  ;;  %v732_v53 = vpop.f32.mrf.mxu0 }
 0x206   :  { %v733_v55 = vadd.f32 %v732_v53, %v683_v52 }
 0x208   :  { %v1052_v56 = vpack.c.bf16 %v733_v55, %v731_v54 }
 0x20a   :  { %1076 = vst [vmem:[%s1368_s5 + $0x18] sm:$0xff] %v1052_v56  }
 0x20d   :  { %v686_v57 = vpop.f32.mrf.mxu3  ;;  %v735_v58 = vpop.f32.mrf.mxu0 }
 0x20e   :  { %v736_v61 = vadd.f32 %v735_v58, %v686_v57 }
 0x215   :  { %v688_v59 = vpop.f32.mrf.mxu3  ;;  %v737_v60 = vpop.f32.mrf.mxu0 }
 0x216   :  { %v738_v62 = vadd.f32 %v737_v60, %v688_v59 }
 0x218   :  { %v1057_v63 = vpack.c.bf16 %v738_v62, %v736_v61 }
 0x21a   :  { %1077 = vst [vmem:[%s1368_s5 + $0x20] sm:$0xff] %v1057_v63  }
 0x21d   :  { %v691_v0 = vpop.f32.mrf.mxu3  ;;  %v740_v1 = vpop.f32.mrf.mxu0 }
 0x21e   :  { %v741_v4 = vadd.f32 %v740_v1, %v691_v0 }
 0x225   :  { %v693_v2 = vpop.f32.mrf.mxu3  ;;  %v742_v3 = vpop.f32.mrf.mxu0 }
 0x226   :  { %v743_v5 = vadd.f32 %v742_v3, %v693_v2 }
 0x228   :  { %v1062_v6 = vpack.c.bf16 %v743_v5, %v741_v4 }
 0x22a   :  { %1078 = vst [vmem:[%s1368_s5 + $0x28] sm:$0xff] %v1062_v6  }
 0x22d   :  { %v696_v7 = vpop.f32.mrf.mxu3  ;;  %v745_v8 = vpop.f32.mrf.mxu0 }
 0x22e   :  { %v746_v11 = vadd.f32 %v745_v8, %v696_v7 }
 0x235   :  { %v698_v9 = vpop.f32.mrf.mxu3  ;;  %v747_v10 = vpop.f32.mrf.mxu0 }
 0x236   :  { %v748_v12 = vadd.f32 %v747_v10, %v698_v9 }
 0x238   :  { %v1067_v13 = vpack.c.bf16 %v748_v12, %v746_v11 }
 0x23a   :  { %1079 = vst [vmem:[%s1368_s5 + $0x30] sm:$0xff] %v1067_v13  }
 0x23d   :  { %v701_v14 = vpop.f32.mrf.mxu3  ;;  %v750_v15 = vpop.f32.mrf.mxu0 }
 0x23e   :  { %v751_v18 = vadd.f32 %v750_v15, %v701_v14 }
 0x245   :  { %v703_v16 = vpop.f32.mrf.mxu3  ;;  %v752_v17 = vpop.f32.mrf.mxu0 }
 0x246   :  { %v753_v19 = vadd.f32 %v752_v17, %v703_v16 }
 0x248   :  { %v1072_v20 = vpack.c.bf16 %v753_v19, %v751_v18 }
 0x24a   :  { %1080 = vst [vmem:[%s1368_s5 + $0x38] sm:$0xff] %v1072_v20  }
 0x24b   :  { %791 = vsyncpa [#allocation3], 1 }
 0x24c   :  { %792 = vsyncpa [#allocation5], 1 }
 0x24d   :  { %793 = vsyncpa [#allocation8], 1 }

</bundles_post_ra>
